<compile_context>
chip_gen: v7x
topology: tpu7x:2x2x1
jax: 0.10.0
libtpu: 0.0.40
codegen_flags: <defaults>
</compile_context>

<pallas_src>
import functools
import math

import jax
import jax.numpy as jnp
from jax.experimental import pallas as pl
from jax.experimental.pallas import tpu as pltpu

LRELU_SLOPE = 0.2
BN_EPS = 1e-5
MXU_DTYPE = jnp.bfloat16          # matmul operand dtype (f32 accumulation everywhere)
ACT_DTYPE = jnp.bfloat16          # dtype of activations stored between pallas_calls
VMEM_BUDGET = 8 * 1024 * 1024     # rough guard: keep single-block kernels far below the
                                  # default scoped-VMEM limit (fail loudly when scaling up)


def _nbytes(x):
    return math.prod(x.shape) * jnp.dtype(x.dtype).itemsize


def _check_fits_vmem(*arrays):
    total = sum(_nbytes(a) for a in arrays)
    if total > VMEM_BUDGET:
        raise ValueError(
            f"single-block kernel would need ~{total} bytes of VMEM (> {VMEM_BUDGET}); "
            "re-tile (and give BatchNorm a two-pass structure) before scaling up")


# ----------------------------- Pallas kernels ------------------------------ #

def _stem_kernel(p_ref, w_ref, b_ref, o_ref):
    """Merged conv1_1/conv1_2: (tm, K) @ (K, C) + bias + LeakyReLU (f32 accumulate)."""
    acc = jnp.dot(p_ref[...], w_ref[...], preferred_element_type=jnp.float32)
    acc = acc + b_ref[...]
    acc = jnp.where(acc >= 0, acc, LRELU_SLOPE * acc)
    o_ref[...] = acc.astype(o_ref.dtype)


def _conv_bn_lrelu_kernel(p_ref, w_ref, b_ref, g_ref, be_ref, o_ref):
    """conv (im2col matmul) + train-mode BatchNorm + LeakyReLU, fused.

    The single block holds EVERY (n, h, w) row of the layer, so the per-channel batch
    statistics (biased variance, like torch training mode) are exact.
    """
    acc = jnp.dot(p_ref[...], w_ref[...], preferred_element_type=jnp.float32)
    acc = acc + b_ref[...]
    mean = jnp.mean(acc, axis=0, keepdims=True)
    var = jnp.mean((acc - mean) ** 2, axis=0, keepdims=True)
    y = (acc - mean) * jax.lax.rsqrt(var + BN_EPS)
    y = y * g_ref[...] + be_ref[...]
    y = jnp.where(y >= 0, y, LRELU_SLOPE * y)
    o_ref[...] = y.astype(o_ref.dtype)


def _conv_bn_lrelu_head_kernel(p_ref, w_ref, b_ref, g_ref, be_ref, w4_ref, b4_ref,
                               o_ref, *, rows_per_image):
    """conv3 + BN3 + LeakyReLU, with conv4 folded in as an epilogue.

    conv4 is a 4x4/valid conv on a 4x4 map, i.e. a full (h, w, c) reduction per image:
    VPU multiply against the tiled conv4 weight + sublane/lane reductions, instead of a
    lane-sparse (K, 1) MXU matmul in a separate pallas_call.
    """
    acc = jnp.dot(p_ref[...], w_ref[...], preferred_element_type=jnp.float32)
    acc = acc + b_ref[...]
    mean = jnp.mean(acc, axis=0, keepdims=True)
    var = jnp.mean((acc - mean) ** 2, axis=0, keepdims=True)
    y = (acc - mean) * jax.lax.rsqrt(var + BN_EPS)
    y = y * g_ref[...] + be_ref[...]
    y = jnp.where(y >= 0, y, LRELU_SLOPE * y)            # (M, C) f32, rows = (n, ho, wo)

    prod = y * w4_ref[...]                               # conv4 weight, tiled per image
    n_images = y.shape[0] // rows_per_image
    sums = []
    for n in range(n_images):                            # static unroll (tiny N)
        blk = prod[n * rows_per_image:(n + 1) * rows_per_image, :]
        s = jnp.sum(blk, axis=0, keepdims=True)          # (1, C)  sublane reduce
        sums.append(jnp.sum(s, axis=1, keepdims=True))   # (1, 1)  lane reduce
    o_ref[...] = jnp.concatenate(sums, axis=0) + b4_ref[...]


# ----------------------------- kernel wrappers ------------------------------ #

def stem_conv(patches, w_mat, bias, *, tile_m=256):
    """patches (M, K) bf16 @ w (K, C) bf16 + bias + LeakyReLU -> (M, C) bf16."""
    M, K = patches.shape
    C = w_mat.shape[1]
    tm = tile_m if (M >= tile_m and M % tile_m == 0) else M
    _check_fits_vmem(jax.ShapeDtypeStruct((tm, K), patches.dtype), w_mat,
                     jax.ShapeDtypeStruct((tm, C), ACT_DTYPE))
    return pl.pallas_call(
        _stem_kernel,
        out_shape=jax.ShapeDtypeStruct((M, C), ACT_DTYPE),
        grid=(M // tm,),
        in_specs=[
            pl.BlockSpec((tm, K), lambda i: (i, 0)),
            pl.BlockSpec((K, C), lambda i: (0, 0)),
            pl.BlockSpec((1, C), lambda i: (0, 0)),
        ],
        out_specs=pl.BlockSpec((tm, C), lambda i: (i, 0)),
        compiler_params=pltpu.CompilerParams(dimension_semantics=("parallel",)),
    )(patches, w_mat, bias.reshape(1, C))


def conv_bn_lrelu(patches, w_mat, bias, gamma, beta):
    """Fused conv + BatchNorm(train) + LeakyReLU.  One full-M block (required so the BN
    batch statistics see every row); guarded against VMEM blow-up when scaling."""
    M, K = patches.shape
    C = w_mat.shape[1]
    _check_fits_vmem(patches, w_mat, jax.ShapeDtypeStruct((M, C), jnp.float32))
    return pl.pallas_call(
        _conv_bn_lrelu_kernel,
        out_shape=jax.ShapeDtypeStruct((M, C), ACT_DTYPE),
        grid=(1,),
        in_specs=[
            pl.BlockSpec((M, K), lambda i: (0, 0)),
            pl.BlockSpec((K, C), lambda i: (0, 0)),
            pl.BlockSpec((1, C), lambda i: (0, 0)),
            pl.BlockSpec((1, C), lambda i: (0, 0)),
            pl.BlockSpec((1, C), lambda i: (0, 0)),
        ],
        out_specs=pl.BlockSpec((M, C), lambda i: (0, 0)),
        compiler_params=pltpu.CompilerParams(dimension_semantics=("arbitrary",)),
    )(patches, w_mat, bias.reshape(1, C), gamma.reshape(1, C), beta.reshape(1, C))


def conv_bn_lrelu_head(patches, w_mat, bias, gamma, beta, w4_rows, b4, *, rows_per_image):
    """Fused conv3 + BN3 + LeakyReLU + conv4 epilogue -> (N, 1) logits."""
    M, K = patches.shape
    C = w_mat.shape[1]
    assert M % rows_per_image == 0
    n_images = M // rows_per_image
    _check_fits_vmem(patches, w_mat, w4_rows, jax.ShapeDtypeStruct((M, C), jnp.float32))
    kernel = functools.partial(_conv_bn_lrelu_head_kernel, rows_per_image=rows_per_image)
    return pl.pallas_call(
        kernel,
        out_shape=jax.ShapeDtypeStruct((n_images, 1), jnp.float32),
        grid=(1,),
        in_specs=[
            pl.BlockSpec((M, K), lambda i: (0, 0)),
            pl.BlockSpec((K, C), lambda i: (0, 0)),
            pl.BlockSpec((1, C), lambda i: (0, 0)),
            pl.BlockSpec((1, C), lambda i: (0, 0)),
            pl.BlockSpec((1, C), lambda i: (0, 0)),
            pl.BlockSpec((M, C), lambda i: (0, 0)),
            pl.BlockSpec((1, 1), lambda i: (0, 0)),
        ],
        out_specs=pl.BlockSpec((n_images, 1), lambda i: (0, 0)),
        compiler_params=pltpu.CompilerParams(dimension_semantics=("arbitrary",)),
    )(patches, w_mat, bias.reshape(1, C), gamma.reshape(1, C), beta.reshape(1, C),
      w4_rows, b4.reshape(1, 1))


# ------------------------------ JAX layout glue ----------------------------- #

def im2col(x_nhwc, k, stride, pad):
    """(N,H,W,C) -> (N*Ho*Wo, k*k*C) patch matrix, feature order [kh, kw, c]."""
    N, H, W, C = x_nhwc.shape
    xp = jnp.pad(x_nhwc, ((0, 0), (pad, pad), (pad, pad), (0, 0)))
    Ho = (H + 2 * pad - k) // stride + 1
    Wo = (W + 2 * pad - k) // stride + 1
    taps = [xp[:, kh:kh + stride * Ho:stride, kw:kw + stride * Wo:stride, :]
            for kh in range(k) for kw in range(k)]
    p = jnp.stack(taps, axis=3)                     # (N, Ho, Wo, k*k, C)
    return p.reshape(N * Ho * Wo, k * k * C), (N, Ho, Wo)


def _w_to_mat(w_oihw):
    """(Cout, Cin, KH, KW) -> (KH*KW*Cin, Cout), matching the im2col feature order."""
    cout = w_oihw.shape[0]
    return jnp.transpose(w_oihw, (2, 3, 1, 0)).reshape(-1, cout)


def _merged_stem_weight(w11, w12):
    """Block-structured (KH*KW*(Cin1+Cin2), Cout1+Cout2) weight: one matmul over the
    channel-concatenated (input|embed) patches emits [conv1_1 | conv1_2] directly."""
    c1o, c1i, k, _ = w11.shape
    c2o, c2i, _, _ = w12.shape
    w = jnp.zeros((k, k, c1i + c2i, c1o + c2o), jnp.float32)
    w = w.at[:, :, :c1i, :c1o].set(jnp.transpose(w11, (2, 3, 1, 0)))
    w = w.at[:, :, c1i:, c1o:].set(jnp.transpose(w12, (2, 3, 1, 0)))
    return w.reshape(k * k * (c1i + c2i), c1o + c2o)


def cdcgan_d_forward(params, inp_nchw, emb_nchw):
    x = jnp.transpose(inp_nchw, (0, 2, 3, 1))
    e = jnp.transpose(emb_nchw, (0, 2, 3, 1))
    xe = jnp.concatenate([x, e], axis=-1).astype(MXU_DTYPE)          # (N, H, W, 3+embed)

    # --- layer 1: conv1_1 / conv1_2 merged into one matmul + LeakyReLU ------------
    p1, (n, ho, wo) = im2col(xe, 4, 2, 1)
    w_stem = _merged_stem_weight(params["conv1_1_w"], params["conv1_2_w"]).astype(MXU_DTYPE)
    b_stem = jnp.concatenate([params["conv1_1_b"], params["conv1_2_b"]])
    c1 = w_stem.shape[1]
    h = stem_conv(p1, w_stem, b_stem).reshape(n, ho, wo, c1)         # == cat([x, y], ch)

    # --- layer 2: conv2 + BN2 + LeakyReLU (fused) ---------------------------------
    p2, (n, ho, wo) = im2col(h, 4, 2, 1)
    w2 = _w_to_mat(params["conv2_w"]).astype(MXU_DTYPE)
    h = conv_bn_lrelu(p2, w2, params["conv2_b"], params["bn2_g"], params["bn2_b"])
    h = h.reshape(n, ho, wo, w2.shape[1])

    # --- layers 3 + 4: conv3 + BN3 + LeakyReLU + conv4 (fused) --------------------
    p3, (n, ho, wo) = im2col(h, 4, 2, 1)
    w3 = _w_to_mat(params["conv3_w"]).astype(MXU_DTYPE)
    w4 = params["conv4_w"]                                           # (1, C3, 4, 4)
    if (w4.shape[2], w4.shape[3]) != (ho, wo):
        raise ValueError("conv4 must reduce the remaining spatial extent to 1x1")
    w4_rows = jnp.tile(jnp.transpose(w4, (0, 2, 3, 1))[0].reshape(ho * wo, -1), (n, 1))
    out = conv_bn_lrelu_head(p3, w3, params["conv3_b"], params["bn3_g"], params["bn3_b"],
                             w4_rows, params["conv4_b"], rows_per_image=ho * wo)
    return out.reshape(n, 1, 1, 1)                                   # NCHW (N, 1, 1, 1)


# --------------------------- parameter init -------------------------------- #

def init_params(key, embed_dim=10, n_filters=32):
    nf = n_filters
    ks = jax.random.split(key, 8)

    def w(k, cout, cin):
        return 0.02 * jax.random.normal(k, (cout, cin, 4, 4), jnp.float32)

    return {
        "conv1_1_w": w(ks[0], nf // 2, 3),
        "conv1_1_b": jnp.zeros((nf // 2,), jnp.float32),
        "conv1_2_w": w(ks[1], nf // 2, embed_dim),
        "conv1_2_b": jnp.zeros((nf // 2,), jnp.float32),
        "conv2_w": w(ks[2], nf * 2, nf),
        "conv2_b": jnp.zeros((nf * 2,), jnp.float32),
        "conv3_w": w(ks[3], nf * 4, nf * 2),
        "conv3_b": jnp.zeros((nf * 4,), jnp.float32),
        "conv4_w": w(ks[4], 1, nf * 4),
        "conv4_b": jnp.zeros((1,), jnp.float32),
        "bn2_g": 1.0 + 0.1 * jax.random.normal(ks[5], (nf * 2,), jnp.float32),
        "bn2_b": 0.1 * jax.random.normal(ks[6], (nf * 2,), jnp.float32),
        "bn3_g": 1.0 + 0.1 * jax.random.normal(ks[7], (nf * 4,), jnp.float32),
        "bn3_b": jnp.zeros((nf * 4,), jnp.float32),
    }


# ------------------------- pure-JAX reference ------------------------------ #
# Mirrors the kernel numerics: convs 1-3 use bf16 operands with f32 accumulation,
# BN / LeakyReLU / conv4 stay f32.

def reference_forward(params, inp, emb):
    def conv(x, w, b, stride, pad, op_dtype):
        out = jax.lax.conv_general_dilated(
            x.astype(op_dtype), w.astype(op_dtype), (stride, stride),
            [(pad, pad), (pad, pad)], dimension_numbers=("NCHW", "OIHW", "NCHW"),
            preferred_element_type=jnp.float32, precision=jax.lax.Precision.HIGHEST)
        return out + b.reshape(1, -1, 1, 1)

    def bn(x, g, bta):
        mean = jnp.mean(x, axis=(0, 2, 3), keepdims=True)
        var = jnp.mean((x - mean) ** 2, axis=(0, 2, 3), keepdims=True)
        return ((x - mean) * jax.lax.rsqrt(var + BN_EPS) * g.reshape(1, -1, 1, 1)
                + bta.reshape(1, -1, 1, 1))

    lrelu = lambda v: jnp.where(v >= 0, v, LRELU_SLOPE * v)
    x = lrelu(conv(inp, params["conv1_1_w"], params["conv1_1_b"], 2, 1, MXU_DTYPE))
    y = lrelu(conv(emb, params["conv1_2_w"], params["conv1_2_b"], 2, 1, MXU_DTYPE))
    h = jnp.concatenate([x, y], axis=1)
    h = lrelu(bn(conv(h, params["conv2_w"], params["conv2_b"], 2, 1, MXU_DTYPE),
                 params["bn2_g"], params["bn2_b"]))
    h = lrelu(bn(conv(h, params["conv3_w"], params["conv3_b"], 2, 1, MXU_DTYPE),
                 params["bn3_g"], params["bn3_b"]))
    return conv(h, params["conv4_w"], params["conv4_b"], 1, 0, jnp.float32)


# --------------------------------- main ------------------------------------ #

if __name__ == "__main__":
    key = jax.random.PRNGKey(0)
    k_inp, k_emb, k_par = jax.random.split(key, 3)

    N, H, W = 2, 32, 32                  # 32x32 images: conv4's 4x4/valid lands on 1x1
    embed_dim, n_filters = 10, 32        # scaled-down n_filters for a small synthetic run

    inp = jax.random.normal(k_inp, (N, 3, H, W), jnp.float32)
    emb = jax.random.normal(k_emb, (N, embed_dim, H, W), jnp.float32)
    params = init_params(k_par, embed_dim=embed_dim, n_filters=n_filters)

    out = jax.jit(cdcgan_d_forward)(params, inp, emb)
    out = jax.block_until_ready(out)
    assert out.shape == (N, 1, 1, 1), out.shape

    ref = reference_forward(params, inp, emb)
    max_err = float(jnp.max(jnp.abs(out - ref)))
    assert jnp.allclose(out, ref, atol=2e-3, rtol=2e-3), max_err

    # TODO(synk): BatchNorm running_mean/running_var buffer updates (training-mode side
    # effect) are not modeled; only the forward output (batch statistics) is reproduced.
    print("KERNEL_OK")
</pallas_src>

<mosaic_0001>
module attributes {stable_mosaic.version = 11 : i64} {
  func.func @_stem_kernel(%arg0: i32, %arg1: memref<256x208xbf16, #tpu.memory_space<vmem>>, %arg2: memref<208x32xbf16, #tpu.memory_space<vmem>>, %arg3: memref<1x32xf32, #tpu.memory_space<vmem>>, %arg4: memref<256x32xbf16, #tpu.memory_space<vmem>>) attributes {dimension_semantics = [#tpu.dimension_semantics<parallel>], iteration_bounds = array<i64: 2>, scalar_prefetch = 0 : i64, scratch_operands = 0 : i64, tpu.core_type = #tpu.core_type<tc>, window_params = [{transform_indices = @transform_0, window_bounds = array<i64: 256, 208>}, {pipeline_mode = #tpu.pipeline_mode<synchronous>, transform_indices = @transform_1, window_bounds = array<i64: 208, 32>}, {pipeline_mode = #tpu.pipeline_mode<synchronous>, transform_indices = @transform_2, window_bounds = array<i64: 1, 32>}, {transform_indices = @transform_3, window_bounds = array<i64: 256, 32>}]} {
    %c0 = arith.constant 0 : index
    %c0_0 = arith.constant 0 : index
    %0 = vector.load %arg1[%c0, %c0_0] : memref<256x208xbf16, #tpu.memory_space<vmem>>, vector<256x208xbf16>
    %c0_1 = arith.constant 0 : index
    %c0_2 = arith.constant 0 : index
    %1 = vector.load %arg2[%c0_1, %c0_2] : memref<208x32xbf16, #tpu.memory_space<vmem>>, vector<208x32xbf16>
    %cst = arith.constant dense<0.000000e+00> : vector<256x32xf32>
    %2 = tpu.matmul %0, %1, %cst {dimension_numbers = #tpu.dot_dimension_numbers<[1], [0], [0], [1], [0, 0, 1, 1], [], []>} : vector<256x208xbf16>, vector<208x32xbf16>, vector<256x32xf32> -> vector<256x32xf32>
    %c0_3 = arith.constant 0 : index
    %c0_4 = arith.constant 0 : index
    %3 = vector.load %arg3[%c0_3, %c0_4] : memref<1x32xf32, #tpu.memory_space<vmem>>, vector<1x32xf32>
    %4 = vector.broadcast %3 : vector<1x32xf32> to vector<256x32xf32>
    %5 = arith.addf %2, %4 : vector<256x32xf32>
    %cst_5 = arith.constant 0.000000e+00 : f32
    %6 = vector.broadcast %cst_5 : f32 to vector<256x32xf32>
    %7 = arith.cmpf oge, %5, %6 : vector<256x32xf32>
    %cst_6 = arith.constant 2.000000e-01 : f32
    %8 = vector.broadcast %cst_6 : f32 to vector<256x32xf32>
    %9 = arith.mulf %8, %5 : vector<256x32xf32>
    %10 = arith.select %7, %5, %9 : vector<256x32xi1>, vector<256x32xf32>
    %11 = arith.truncf %10 : vector<256x32xf32> to vector<256x32xbf16>
    %c0_7 = arith.constant 0 : index
    %c0_8 = arith.constant 0 : index
    %12 = vector.load %arg4[%c0_7, %c0_8] : memref<256x32xbf16, #tpu.memory_space<vmem>>, vector<256x32xbf16>
    tpu.vector_store %arg4[%c0_7, %c0_8], %11 {strides = array<i32>} : memref<256x32xbf16, #tpu.memory_space<vmem>>, vector<256x32xbf16>,
    return
  }
  func.func @transform_0(%arg0: i32) -> (i32, i32) {
    %c0_i32 = arith.constant 0 : i32
    %c0_i32_0 = arith.constant 0 : i32
    return %arg0, %c0_i32 : i32, i32
  }
  func.func @transform_1(%arg0: i32) -> (i32, i32) {
    %c0_i32 = arith.constant 0 : i32
    %c0_i32_0 = arith.constant 0 : i32
    %c0_i32_1 = arith.constant 0 : i32
    return %c0_i32, %c0_i32_0 : i32, i32
  }
  func.func @transform_2(%arg0: i32) -> (i32, i32) {
    %c0_i32 = arith.constant 0 : i32
    %c0_i32_0 = arith.constant 0 : i32
    %c0_i32_1 = arith.constant 0 : i32
    return %c0_i32, %c0_i32_0 : i32, i32
  }
  func.func @transform_3(%arg0: i32) -> (i32, i32) {
    %c0_i32 = arith.constant 0 : i32
    %c0_i32_0 = arith.constant 0 : i32
    return %arg0, %c0_i32 : i32, i32
  }
}

module attributes {stable_mosaic.version = 11 : i64} {
  func.func @_conv_bn_lrelu_kernel(%arg0: i32, %arg1: memref<128x512xbf16, #tpu.memory_space<vmem>>, %arg2: memref<512x64xbf16, #tpu.memory_space<vmem>>, %arg3: memref<1x64xf32, #tpu.memory_space<vmem>>, %arg4: memref<1x64xf32, #tpu.memory_space<vmem>>, %arg5: memref<1x64xf32, #tpu.memory_space<vmem>>, %arg6: memref<128x64xbf16, #tpu.memory_space<vmem>>) attributes {dimension_semantics = [#tpu.dimension_semantics<arbitrary>], iteration_bounds = array<i64: 1>, scalar_prefetch = 0 : i64, scratch_operands = 0 : i64, tpu.core_type = #tpu.core_type<tc>, window_params = [{pipeline_mode = #tpu.pipeline_mode<synchronous>, transform_indices = @transform_0, window_bounds = array<i64: 128, 512>}, {pipeline_mode = #tpu.pipeline_mode<synchronous>, transform_indices = @transform_1, window_bounds = array<i64: 512, 64>}, {pipeline_mode = #tpu.pipeline_mode<synchronous>, transform_indices = @transform_2, window_bounds = array<i64: 1, 64>}, {pipeline_mode = #tpu.pipeline_mode<synchronous>, transform_indices = @transform_3, window_bounds = array<i64: 1, 64>}, {pipeline_mode = #tpu.pipeline_mode<synchronous>, transform_indices = @transform_4, window_bounds = array<i64: 1, 64>}, {pipeline_mode = #tpu.pipeline_mode<synchronous>, transform_indices = @transform_5, window_bounds = array<i64: 128, 64>}]} {
    %c0 = arith.constant 0 : index
    %c0_0 = arith.constant 0 : index
    %0 = vector.load %arg1[%c0, %c0_0] : memref<128x512xbf16, #tpu.memory_space<vmem>>, vector<128x512xbf16>
    %c0_1 = arith.constant 0 : index
    %c0_2 = arith.constant 0 : index
    %1 = vector.load %arg2[%c0_1, %c0_2] : memref<512x64xbf16, #tpu.memory_space<vmem>>, vector<512x64xbf16>
    %cst = arith.constant dense<0.000000e+00> : vector<128x64xf32>
    %2 = tpu.matmul %0, %1, %cst {dimension_numbers = #tpu.dot_dimension_numbers<[1], [0], [0], [1], [0, 0, 1, 1], [], []>} : vector<128x512xbf16>, vector<512x64xbf16>, vector<128x64xf32> -> vector<128x64xf32>
    %c0_3 = arith.constant 0 : index
    %c0_4 = arith.constant 0 : index
    %3 = vector.load %arg3[%c0_3, %c0_4] : memref<1x64xf32, #tpu.memory_space<vmem>>, vector<1x64xf32>
    %4 = vector.broadcast %3 : vector<1x64xf32> to vector<128x64xf32>
    %5 = arith.addf %2, %4 : vector<128x64xf32>
    %cst_5 = arith.constant dense<0.000000e+00> : vector<64xf32>
    %6 = vector.multi_reduction <add>, %5, %cst_5 [0] : vector<128x64xf32> to vector<64xf32>
    %7 = vector.shape_cast %6 : vector<64xf32> to vector<1x64xf32>
    %cst_6 = arith.constant 1.280000e+02 : f32
    %8 = vector.broadcast %cst_6 : f32 to vector<1x64xf32>
    %9 = arith.divf %7, %8 : vector<1x64xf32>
    %10 = vector.broadcast %9 : vector<1x64xf32> to vector<128x64xf32>
    %11 = arith.subf %5, %10 : vector<128x64xf32>
    %12 = arith.mulf %11, %11 : vector<128x64xf32>
    %cst_7 = arith.constant dense<0.000000e+00> : vector<64xf32>
    %13 = vector.multi_reduction <add>, %12, %cst_7 [0] : vector<128x64xf32> to vector<64xf32>
    %14 = vector.shape_cast %13 : vector<64xf32> to vector<1x64xf32>
    %cst_8 = arith.constant 1.280000e+02 : f32
    %15 = vector.broadcast %cst_8 : f32 to vector<1x64xf32>
    %16 = arith.divf %14, %15 : vector<1x64xf32>
    %17 = vector.broadcast %9 : vector<1x64xf32> to vector<128x64xf32>
    %18 = arith.subf %5, %17 : vector<128x64xf32>
    %cst_9 = arith.constant 9.99999974E-6 : f32
    %19 = vector.broadcast %cst_9 : f32 to vector<1x64xf32>
    %20 = arith.addf %16, %19 : vector<1x64xf32>
    %21 = math.rsqrt %20 : vector<1x64xf32>
    %22 = vector.broadcast %21 : vector<1x64xf32> to vector<128x64xf32>
    %23 = arith.mulf %18, %22 : vector<128x64xf32>
    %c0_10 = arith.constant 0 : index
    %c0_11 = arith.constant 0 : index
    %24 = vector.load %arg4[%c0_10, %c0_11] : memref<1x64xf32, #tpu.memory_space<vmem>>, vector<1x64xf32>
    %25 = vector.broadcast %24 : vector<1x64xf32> to vector<128x64xf32>
    %26 = arith.mulf %23, %25 : vector<128x64xf32>
    %c0_12 = arith.constant 0 : index
    %c0_13 = arith.constant 0 : index
    %27 = vector.load %arg5[%c0_12, %c0_13] : memref<1x64xf32, #tpu.memory_space<vmem>>, vector<1x64xf32>
    %28 = vector.broadcast %27 : vector<1x64xf32> to vector<128x64xf32>
    %29 = arith.addf %26, %28 : vector<128x64xf32>
    %cst_14 = arith.constant 0.000000e+00 : f32
    %30 = vector.broadcast %cst_14 : f32 to vector<128x64xf32>
    %31 = arith.cmpf oge, %29, %30 : vector<128x64xf32>
    %cst_15 = arith.constant 2.000000e-01 : f32
    %32 = vector.broadcast %cst_15 : f32 to vector<128x64xf32>
    %33 = arith.mulf %32, %29 : vector<128x64xf32>
    %34 = arith.select %31, %29, %33 : vector<128x64xi1>, vector<128x64xf32>
    %35 = arith.truncf %34 : vector<128x64xf32> to vector<128x64xbf16>
    %c0_16 = arith.constant 0 : index
    %c0_17 = arith.constant 0 : index
    %36 = vector.load %arg6[%c0_16, %c0_17] : memref<128x64xbf16, #tpu.memory_space<vmem>>, vector<128x64xbf16>
    tpu.vector_store %arg6[%c0_16, %c0_17], %35 {strides = array<i32>} : memref<128x64xbf16, #tpu.memory_space<vmem>>, vector<128x64xbf16>,
    return
  }
  func.func @transform_0(%arg0: i32) -> (i32, i32) {
    %c0_i32 = arith.constant 0 : i32
    %c0_i32_0 = arith.constant 0 : i32
    %c0_i32_1 = arith.constant 0 : i32
    return %c0_i32, %c0_i32_0 : i32, i32
  }
  func.func @transform_1(%arg0: i32) -> (i32, i32) {
    %c0_i32 = arith.constant 0 : i32
    %c0_i32_0 = arith.constant 0 : i32
    %c0_i32_1 = arith.constant 0 : i32
    return %c0_i32, %c0_i32_0 : i32, i32
  }
  func.func @transform_2(%arg0: i32) -> (i32, i32) {
    %c0_i32 = arith.constant 0 : i32
    %c0_i32_0 = arith.constant 0 : i32
    %c0_i32_1 = arith.constant 0 : i32
    return %c0_i32, %c0_i32_0 : i32, i32
  }
  func.func @transform_3(%arg0: i32) -> (i32, i32) {
    %c0_i32 = arith.constant 0 : i32
    %c0_i32_0 = arith.constant 0 : i32
    %c0_i32_1 = arith.constant 0 : i32
    return %c0_i32, %c0_i32_0 : i32, i32
  }
  func.func @transform_4(%arg0: i32) -> (i32, i32) {
    %c0_i32 = arith.constant 0 : i32
    %c0_i32_0 = arith.constant 0 : i32
    %c0_i32_1 = arith.constant 0 : i32
    return %c0_i32, %c0_i32_0 : i32, i32
  }
  func.func @transform_5(%arg0: i32) -> (i32, i32) {
    %c0_i32 = arith.constant 0 : i32
    %c0_i32_0 = arith.constant 0 : i32
    %c0_i32_1 = arith.constant 0 : i32
    return %c0_i32, %c0_i32_0 : i32, i32
  }
}

module attributes {stable_mosaic.version = 11 : i64} {
  func.func @_conv_bn_lrelu_head_kernel(%arg0: i32, %arg1: memref<32x1024xbf16, #tpu.memory_space<vmem>>, %arg2: memref<1024x128xbf16, #tpu.memory_space<vmem>>, %arg3: memref<1x128xf32, #tpu.memory_space<vmem>>, %arg4: memref<1x128xf32, #tpu.memory_space<vmem>>, %arg5: memref<1x128xf32, #tpu.memory_space<vmem>>, %arg6: memref<32x128xf32, #tpu.memory_space<vmem>>, %arg7: memref<1x1xf32, #tpu.memory_space<vmem>>, %arg8: memref<2x1xf32, #tpu.memory_space<vmem>>) attributes {dimension_semantics = [#tpu.dimension_semantics<arbitrary>], iteration_bounds = array<i64: 1>, scalar_prefetch = 0 : i64, scratch_operands = 0 : i64, tpu.core_type = #tpu.core_type<tc>, window_params = [{pipeline_mode = #tpu.pipeline_mode<synchronous>, transform_indices = @transform_0, window_bounds = array<i64: 32, 1024>}, {pipeline_mode = #tpu.pipeline_mode<synchronous>, transform_indices = @transform_1, window_bounds = array<i64: 1024, 128>}, {pipeline_mode = #tpu.pipeline_mode<synchronous>, transform_indices = @transform_2, window_bounds = array<i64: 1, 128>}, {pipeline_mode = #tpu.pipeline_mode<synchronous>, transform_indices = @transform_3, window_bounds = array<i64: 1, 128>}, {pipeline_mode = #tpu.pipeline_mode<synchronous>, transform_indices = @transform_4, window_bounds = array<i64: 1, 128>}, {pipeline_mode = #tpu.pipeline_mode<synchronous>, transform_indices = @transform_5, window_bounds = array<i64: 32, 128>}, {pipeline_mode = #tpu.pipeline_mode<synchronous>, transform_indices = @transform_6, window_bounds = array<i64: 1, 1>}, {pipeline_mode = #tpu.pipeline_mode<synchronous>, transform_indices = @transform_7, window_bounds = array<i64: 2, 1>}]} {
    %c0 = arith.constant 0 : index
    %c0_0 = arith.constant 0 : index
    %0 = vector.load %arg1[%c0, %c0_0] : memref<32x1024xbf16, #tpu.memory_space<vmem>>, vector<32x1024xbf16>
    %c0_1 = arith.constant 0 : index
    %c0_2 = arith.constant 0 : index
    %1 = vector.load %arg2[%c0_1, %c0_2] : memref<1024x128xbf16, #tpu.memory_space<vmem>>, vector<1024x128xbf16>
    %cst = arith.constant dense<0.000000e+00> : vector<32x128xf32>
    %2 = tpu.matmul %0, %1, %cst {dimension_numbers = #tpu.dot_dimension_numbers<[1], [0], [0], [1], [0, 0, 1, 1], [], []>} : vector<32x1024xbf16>, vector<1024x128xbf16>, vector<32x128xf32> -> vector<32x128xf32>
    %c0_3 = arith.constant 0 : index
    %c0_4 = arith.constant 0 : index
    %3 = vector.load %arg3[%c0_3, %c0_4] : memref<1x128xf32, #tpu.memory_space<vmem>>, vector<1x128xf32>
    %4 = vector.broadcast %3 : vector<1x128xf32> to vector<32x128xf32>
    %5 = arith.addf %2, %4 : vector<32x128xf32>
    %cst_5 = arith.constant dense<0.000000e+00> : vector<128xf32>
    %6 = vector.multi_reduction <add>, %5, %cst_5 [0] : vector<32x128xf32> to vector<128xf32>
    %7 = vector.shape_cast %6 : vector<128xf32> to vector<1x128xf32>
    %cst_6 = arith.constant 3.200000e+01 : f32
    %8 = vector.broadcast %cst_6 : f32 to vector<1x128xf32>
    %9 = arith.divf %7, %8 : vector<1x128xf32>
    %10 = vector.broadcast %9 : vector<1x128xf32> to vector<32x128xf32>
    %11 = arith.subf %5, %10 : vector<32x128xf32>
    %12 = arith.mulf %11, %11 : vector<32x128xf32>
    %cst_7 = arith.constant dense<0.000000e+00> : vector<128xf32>
    %13 = vector.multi_reduction <add>, %12, %cst_7 [0] : vector<32x128xf32> to vector<128xf32>
    %14 = vector.shape_cast %13 : vector<128xf32> to vector<1x128xf32>
    %cst_8 = arith.constant 3.200000e+01 : f32
    %15 = vector.broadcast %cst_8 : f32 to vector<1x128xf32>
    %16 = arith.divf %14, %15 : vector<1x128xf32>
    %17 = vector.broadcast %9 : vector<1x128xf32> to vector<32x128xf32>
    %18 = arith.subf %5, %17 : vector<32x128xf32>
    %cst_9 = arith.constant 9.99999974E-6 : f32
    %19 = vector.broadcast %cst_9 : f32 to vector<1x128xf32>
    %20 = arith.addf %16, %19 : vector<1x128xf32>
    %21 = math.rsqrt %20 : vector<1x128xf32>
    %22 = vector.broadcast %21 : vector<1x128xf32> to vector<32x128xf32>
    %23 = arith.mulf %18, %22 : vector<32x128xf32>
    %c0_10 = arith.constant 0 : index
    %c0_11 = arith.constant 0 : index
    %24 = vector.load %arg4[%c0_10, %c0_11] : memref<1x128xf32, #tpu.memory_space<vmem>>, vector<1x128xf32>
    %25 = vector.broadcast %24 : vector<1x128xf32> to vector<32x128xf32>
    %26 = arith.mulf %23, %25 : vector<32x128xf32>
    %c0_12 = arith.constant 0 : index
    %c0_13 = arith.constant 0 : index
    %27 = vector.load %arg5[%c0_12, %c0_13] : memref<1x128xf32, #tpu.memory_space<vmem>>, vector<1x128xf32>
    %28 = vector.broadcast %27 : vector<1x128xf32> to vector<32x128xf32>
    %29 = arith.addf %26, %28 : vector<32x128xf32>
    %cst_14 = arith.constant 0.000000e+00 : f32
    %30 = vector.broadcast %cst_14 : f32 to vector<32x128xf32>
    %31 = arith.cmpf oge, %29, %30 : vector<32x128xf32>
    %cst_15 = arith.constant 2.000000e-01 : f32
    %32 = vector.broadcast %cst_15 : f32 to vector<32x128xf32>
    %33 = arith.mulf %32, %29 : vector<32x128xf32>
    %34 = arith.select %31, %29, %33 : vector<32x128xi1>, vector<32x128xf32>
    %c0_16 = arith.constant 0 : index
    %c0_17 = arith.constant 0 : index
    %35 = vector.load %arg6[%c0_16, %c0_17] : memref<32x128xf32, #tpu.memory_space<vmem>>, vector<32x128xf32>
    %36 = arith.mulf %34, %35 : vector<32x128xf32>
    %37 = vector.extract_strided_slice %36 {offsets = [0, 0], sizes = [16, 128], strides = [1, 1]} : vector<32x128xf32> to vector<16x128xf32>
    %cst_18 = arith.constant dense<0.000000e+00> : vector<128xf32>
    %38 = vector.multi_reduction <add>, %37, %cst_18 [0] : vector<16x128xf32> to vector<128xf32>
    %39 = vector.shape_cast %38 : vector<128xf32> to vector<1x128xf32>
    %cst_19 = arith.constant dense<0.000000e+00> : vector<1xf32>
    %40 = vector.multi_reduction <add>, %39, %cst_19 [1] : vector<1x128xf32> to vector<1xf32>
    %41 = vector.shape_cast %40 : vector<1xf32> to vector<1x1xf32>
    %42 = vector.extract_strided_slice %36 {offsets = [16, 0], sizes = [16, 128], strides = [1, 1]} : vector<32x128xf32> to vector<16x128xf32>
    %cst_20 = arith.constant dense<0.000000e+00> : vector<128xf32>
    %43 = vector.multi_reduction <add>, %42, %cst_20 [0] : vector<16x128xf32> to vector<128xf32>
    %44 = vector.shape_cast %43 : vector<128xf32> to vector<1x128xf32>
    %cst_21 = arith.constant dense<0.000000e+00> : vector<1xf32>
    %45 = vector.multi_reduction <add>, %44, %cst_21 [1] : vector<1x128xf32> to vector<1xf32>
    %46 = vector.shape_cast %45 : vector<1xf32> to vector<1x1xf32>
    %47 = tpu.concatenate %41, %46 in 0 : vector<1x1xf32>, vector<1x1xf32> -> vector<2x1xf32>
    %c0_22 = arith.constant 0 : index
    %c0_23 = arith.constant 0 : index
    %48 = vector.load %arg7[%c0_22, %c0_23] : memref<1x1xf32, #tpu.memory_space<vmem>>, vector<1x1xf32>
    %49 = vector.broadcast %48 : vector<1x1xf32> to vector<2x1xf32>
    %50 = arith.addf %47, %49 : vector<2x1xf32>
    %c0_24 = arith.constant 0 : index
    %c0_25 = arith.constant 0 : index
    %51 = vector.load %arg8[%c0_24, %c0_25] : memref<2x1xf32, #tpu.memory_space<vmem>>, vector<2x1xf32>
    tpu.vector_store %arg8[%c0_24, %c0_25], %50 {strides = array<i32>} : memref<2x1xf32, #tpu.memory_space<vmem>>, vector<2x1xf32>,
    return
  }
  func.func @transform_0(%arg0: i32) -> (i32, i32) {
    %c0_i32 = arith.constant 0 : i32
    %c0_i32_0 = arith.constant 0 : i32
    %c0_i32_1 = arith.constant 0 : i32
    return %c0_i32, %c0_i32_0 : i32, i32
  }
  func.func @transform_1(%arg0: i32) -> (i32, i32) {
    %c0_i32 = arith.constant 0 : i32
    %c0_i32_0 = arith.constant 0 : i32
    %c0_i32_1 = arith.constant 0 : i32
    return %c0_i32, %c0_i32_0 : i32, i32
  }
  func.func @transform_2(%arg0: i32) -> (i32, i32) {
    %c0_i32 = arith.constant 0 : i32
    %c0_i32_0 = arith.constant 0 : i32
    %c0_i32_1 = arith.constant 0 : i32
    return %c0_i32, %c0_i32_0 : i32, i32
  }
  func.func @transform_3(%arg0: i32) -> (i32, i32) {
    %c0_i32 = arith.constant 0 : i32
    %c0_i32_0 = arith.constant 0 : i32
    %c0_i32_1 = arith.constant 0 : i32
    return %c0_i32, %c0_i32_0 : i32, i32
  }
  func.func @transform_4(%arg0: i32) -> (i32, i32) {
    %c0_i32 = arith.constant 0 : i32
    %c0_i32_0 = arith.constant 0 : i32
    %c0_i32_1 = arith.constant 0 : i32
    return %c0_i32, %c0_i32_0 : i32, i32
  }
  func.func @transform_5(%arg0: i32) -> (i32, i32) {
    %c0_i32 = arith.constant 0 : i32
    %c0_i32_0 = arith.constant 0 : i32
    %c0_i32_1 = arith.constant 0 : i32
    return %c0_i32, %c0_i32_0 : i32, i32
  }
  func.func @transform_6(%arg0: i32) -> (i32, i32) {
    %c0_i32 = arith.constant 0 : i32
    %c0_i32_0 = arith.constant 0 : i32
    %c0_i32_1 = arith.constant 0 : i32
    return %c0_i32, %c0_i32_0 : i32, i32
  }
  func.func @transform_7(%arg0: i32) -> (i32, i32) {
    %c0_i32 = arith.constant 0 : i32
    %c0_i32_0 = arith.constant 0 : i32
    %c0_i32_1 = arith.constant 0 : i32
    return %c0_i32, %c0_i32_0 : i32, i32
  }
}

</mosaic_0001>

<bundles_post_ra>
// kernel: cdcgan_d_forward.3
= control target key start
LH: loop header
LB: loop body
LE: loop exit
PB: predicated region body
PF: predicated region fallthrough
CT: control target
= control target key end

     0   :  { %s1252_s12 = smov 0   ;;  %s1491_s0 = inlined_call_operand.vmem [shape: bf16[512,208], index: 0, kind: input, shape index: {}]   ;;  %s1492_s1 = inlined_call_operand.vmem [shape: bf16[208,32], index: 1, kind: input, shape index: {}]   ;;  %s1493_s2 = inlined_call_operand.vmem [shape: f32[1,32], index: 2, kind: input, shape index: {}]   ;;  %s1494_s3 = inlined_call_operand.vmem [shape: bf16[512,32], index: 3, kind: output, shape index: {}]  }
   0x1 LB: > { %s988_s13 = sadd.s32 4294967295, %s1229_s12   ;;  %p992_p0 = scmp.ge.s32.totalorder %s1229_s12, 1  ;;  %s1229_s12 = sphi %s1252_s12, %s13_s12  }
   0x2   : > { %p139_p1 = scmp.lt.s32.totalorder %s1229_s12, 3 }
   0x4   : > { %p140_p2 = pnand %p992_p0, %p139_p1 }
   0x5   : > { %v1162_v0 = vld [vmem:[%s1492_s1] sm:$0xff] (!%p140_p2)   ;;  %v1231_v1 = vmov (!%p140_p2), 0   ;;  %s993_s16 = sshll.u32 (!%p140_p2), %s988_s13, 5  ;;  %v1163_v2 = vld [vmem:[%s1492_s1 + $0x8] sm:$0xff] (!%p140_p2)   ;;  %v1164_v3 = vld [vmem:[%s1492_s1 + $0x10] sm:$0xff] (!%p140_p2)   ;;  %vm465_vm0 = vcmask (!%p140_p2), 654336  }
   0x6   : > { %143 = sbr.rel (%p140_p2) target bundleno = 337 (0x151), region = 32  ;;  %514 = vmatprep.subr.bf16.mxu0 (!%p140_p2), %v1231_v1  ;;  %1127 = vmatprep.subr.bf16.mxu1 (!%p140_p2), %v1231_v1  ;;  %p165_p3 = scmp.lt.s32.totalorder (!%p140_p2), %s993_s16, 63  ;;  %v1165_v4 = vld [vmem:[%s1492_s1 + $0x18] sm:$0xff] (!%p140_p2)   ;;  %v1166_v5 = vld [vmem:[%s1492_s1 + $0x20] sm:$0xff] (!%p140_p2)   ;;  %v1167_v8 = vld [vmem:[%s1492_s1 + $0x28] sm:$0xff] (!%p140_p2)   ;;  %vm899_vm3 = vcmask (!%p140_p2), 257024  }
   0x7   : > { %515 = vmatpush1.bf16.msra.mxu0 (!%p140_p2), %v1162_v0  ;;  %1140 = vmatpush1.bf16.msra.mxu1 (!%p140_p2), %v1162_v0  ;;  %v1168_v9 = vld [vmem:[%s1492_s1 + $0x30] sm:$0xff] (!%p140_p2)   ;;  %v1169_v10 = vld [vmem:[%s1492_s1 + $0x38] sm:$0xff] (!%p140_p2)   ;;  %v1170_v11 = vld [vmem:[%s1492_s1 + $0x40] sm:$0xff] (!%p140_p2)  }
   0x8   : > { %516 = vmatprep.subr.bf16.mxu0 (!%p140_p2), %v1231_v1  ;;  %1128 = vmatprep.subr.bf16.mxu1 (!%p140_p2), %v1231_v1  ;;  %v1171_v12 = vld [vmem:[%s1492_s1 + $0x48] sm:$0xff] (!%p140_p2)   ;;  %v1172_v13 = vld [vmem:[%s1492_s1 + $0x50] sm:$0xff] (!%p140_p2)   ;;  %v1173_v14 = vld [vmem:[%s1492_s1 + $0x58] sm:$0xff] (!%p140_p2)  }
   0x9   : > { %v1174_v15 = vld [vmem:[%s1492_s1 + $0x60] sm:$0xff] (!%p140_p2)  }
   0xa   : > { %v1384_v46 = vld [vmem:[%s1493_s2] ss:$0 sm:$0xff] (!%p140_p2) }
   0xb   : > { %517 = vmatpush1.bf16.msra.mxu0 (!%p140_p2), %v1163_v2  ;;  %1141 = vmatpush1.bf16.msra.mxu1 (!%p140_p2), %v1163_v2 }
   0xc   : > { %518 = vmatprep.subr.bf16.mxu0 (!%p140_p2), %v1231_v1  ;;  %1129 = vmatprep.subr.bf16.mxu1 (!%p140_p2), %v1231_v1 }
   0xd   : > { %s1496_s16 = smov (!%p165_p3, %s993_s16), 63 }
   0xe   : > { %s1094_s21 = sshll.u32 %s1496_s16, 3  ;;  %s997_s22 = sshll.u32 %s1496_s16, 2 }
   0xf   : > { %519 = vmatpush1.bf16.msra.mxu0 %v1164_v3  ;;  %1142 = vmatpush1.bf16.msra.mxu1 %v1164_v3  ;;  %s1286_s26 = scalar_lea.vmem %s1491_s0, %s1094_s21  ;;  %s1394_s25 = scalar_lea.vmem %s1494_s3, %s997_s22 }
  0x10   : > { %520 = vmatprep.subr.bf16.mxu0 %v1231_v1  ;;  %1130 = vmatprep.subr.bf16.mxu1 %v1231_v1  ;;  %v1177_v6 = vld [vmem:[%s1286_s26 + $0x4] ss:$8 sps:$4 sm:$0xff]   ;;  %v1175_v16 = vld [vmem:[%s1286_s26] ss:$8 sps:$4 sm:$0xff]   ;;  %v1181_v18 = vld [vmem:[%s1286_s26 + $0x14] ss:$8 sps:$4 sm:$0xff]  }
  0x11   : > { %v1180_v7 = vld [vmem:[%s1286_s26 + $0x84] ss:$8 sps:$4 sm:$0xff]   ;;  %1044 = vmatprep.mubr.msk.bf16.mxu0 %vm465_vm0, %v1177_v6  ;;  %v1178_v17 = vld [vmem:[%s1286_s26 + $0x80] ss:$8 sps:$4 sm:$0xff]   ;;  %v1183_v19 = vld [vmem:[%s1286_s26 + $0x94] ss:$8 sps:$4 sm:$0xff]  }
  0x12   : > { %1052 = vmatprep.mubr.msk.bf16.mxu1 %vm465_vm0, %v1180_v7  ;;  %v1185_v20 = vld [vmem:[%s1286_s26 + $0x10] ss:$8 sps:$4 sm:$0xff]   ;;  %v1187_v22 = vld [vmem:[%s1286_s26 + $0x24] ss:$8 sps:$4 sm:$0xff]   ;;  %v1191_v24 = vld [vmem:[%s1286_s26 + $0x20] ss:$8 sps:$4 sm:$0xff]  }
  0x13   : > { %521 = vmatpush1.bf16.msra.mxu0 %v1165_v4  ;;  %1143 = vmatpush1.bf16.msra.mxu1 %v1165_v4  ;;  %v1186_v21 = vld [vmem:[%s1286_s26 + $0x90] ss:$8 sps:$4 sm:$0xff]   ;;  %v1189_v23 = vld [vmem:[%s1286_s26 + $0xa4] ss:$8 sps:$4 sm:$0xff]   ;;  %v1192_v25 = vld [vmem:[%s1286_s26 + $0xa0] ss:$8 sps:$4 sm:$0xff]  }
  0x14   : > { %522 = vmatprep.subr.bf16.mxu0 %v1231_v1  ;;  %1131 = vmatprep.subr.bf16.mxu1 %v1231_v1  ;;  %v1193_v26 = vld [vmem:[%s1286_s26 + $0x34] ss:$8 sps:$4 sm:$0xff]   ;;  %v1197_v28 = vld [vmem:[%s1286_s26 + $0x30] ss:$8 sps:$4 sm:$0xff]   ;;  %v1199_v30 = vld [vmem:[%s1286_s26 + $0x44] ss:$8 sps:$4 sm:$0xff]  }
  0x15   : > { %v1195_v27 = vld [vmem:[%s1286_s26 + $0xb4] ss:$8 sps:$4 sm:$0xff]   ;;  %v1198_v29 = vld [vmem:[%s1286_s26 + $0xb0] ss:$8 sps:$4 sm:$0xff]   ;;  %v1201_v31 = vld [vmem:[%s1286_s26 + $0xc4] ss:$8 sps:$4 sm:$0xff]  }
  0x16   : > { %v1203_v32 = vld [vmem:[%s1286_s26 + $0x40] ss:$8 sps:$4 sm:$0xff]   ;;  %v1205_v34 = vld [vmem:[%s1286_s26 + $0x54] ss:$8 sps:$4 sm:$0xff]   ;;  %v1209_v36 = vld [vmem:[%s1286_s26 + $0x50] ss:$8 sps:$4 sm:$0xff]  }
  0x17   : > { %523 = vmatpush1.bf16.msra.mxu0 %v1166_v5  ;;  %1144 = vmatpush1.bf16.msra.mxu1 %v1166_v5  ;;  %v1204_v33 = vld [vmem:[%s1286_s26 + $0xc0] ss:$8 sps:$4 sm:$0xff]   ;;  %v1207_v35 = vld [vmem:[%s1286_s26 + $0xd4] ss:$8 sps:$4 sm:$0xff]   ;;  %v1210_v37 = vld [vmem:[%s1286_s26 + $0xd0] ss:$8 sps:$4 sm:$0xff]  }
  0x18   : > { %524 = vmatprep.subr.bf16.mxu0 %v1231_v1  ;;  %1132 = vmatprep.subr.bf16.mxu1 %v1231_v1  ;;  %v1211_v38 = vld [vmem:[%s1286_s26 + $0x64] ss:$8 sps:$4 sm:$0xff]   ;;  %v1215_v40 = vld [vmem:[%s1286_s26 + $0x60] ss:$8 sps:$4 sm:$0xff]   ;;  %v1217_v42 = vld [vmem:[%s1286_s26 + $0x74] ss:$8 sps:$4 sm:$0xff]  }
  0x19   : > { %v1213_v39 = vld [vmem:[%s1286_s26 + $0xe4] ss:$8 sps:$4 sm:$0xff]   ;;  %v1216_v41 = vld [vmem:[%s1286_s26 + $0xe0] ss:$8 sps:$4 sm:$0xff]   ;;  %v1219_v43 = vld [vmem:[%s1286_s26 + $0xf4] ss:$8 sps:$4 sm:$0xff]  }
  0x1a   : > { %v1221_v44 = vld [vmem:[%s1286_s26 + $0x70] ss:$8 sps:$4 sm:$0xff]  }
  0x1b   : > { %525 = vmatpush1.bf16.msra.mxu0 %v1167_v8  ;;  %1145 = vmatpush1.bf16.msra.mxu1 %v1167_v8  ;;  %v1222_v45 = vld [vmem:[%s1286_s26 + $0xf0] ss:$8 sps:$4 sm:$0xff]  }
  0x1c   : > { %526 = vmatprep.subr.bf16.mxu0 %v1231_v1  ;;  %1133 = vmatprep.subr.bf16.mxu1 %v1231_v1 }
  0x1f   : > { %527 = vmatpush1.bf16.msra.mxu0 %v1168_v9  ;;  %1146 = vmatpush1.bf16.msra.mxu1 %v1168_v9 }
  0x20   : > { %528 = vmatprep.subr.bf16.mxu0 %v1231_v1  ;;  %1134 = vmatprep.subr.bf16.mxu1 %v1231_v1 }
  0x23   : > { %529 = vmatpush1.bf16.msra.mxu0 %v1169_v10  ;;  %1147 = vmatpush1.bf16.msra.mxu1 %v1169_v10 }
  0x24   : > { %530 = vmatprep.subr.bf16.mxu0 %v1231_v1  ;;  %1135 = vmatprep.subr.bf16.mxu1 %v1231_v1 }
  0x27   : > { %531 = vmatpush1.bf16.msra.mxu0 %v1170_v11  ;;  %1148 = vmatpush1.bf16.msra.mxu1 %v1170_v11 }
  0x28   : > { %532 = vmatprep.subr.bf16.mxu0 %v1231_v1  ;;  %1136 = vmatprep.subr.bf16.mxu1 %v1231_v1 }
  0x2b   : > { %533 = vmatpush1.bf16.msra.mxu0 %v1171_v12  ;;  %1149 = vmatpush1.bf16.msra.mxu1 %v1171_v12 }
  0x2c   : > { %534 = vmatprep.subr.bf16.mxu0 %v1231_v1  ;;  %1137 = vmatprep.subr.bf16.mxu1 %v1231_v1 }
  0x2f   : > { %535 = vmatpush1.bf16.msra.mxu0 %v1172_v13  ;;  %1150 = vmatpush1.bf16.msra.mxu1 %v1172_v13 }
  0x30   : > { %536 = vmatprep.subr.bf16.mxu0 %v1231_v1  ;;  %1138 = vmatprep.subr.bf16.mxu1 %v1231_v1 }
  0x33   : > { %537 = vmatpush1.bf16.msra.mxu0 %v1173_v14  ;;  %1151 = vmatpush1.bf16.msra.mxu1 %v1173_v14 }
  0x34   : > { %538 = vmatprep.subr.bf16.mxu0 %v1231_v1  ;;  %1139 = vmatprep.subr.bf16.mxu1 %v1231_v1 }
  0x37   : > { %539 = vmatpush1.bf16.msra.mxu0 %v1174_v15  ;;  %1152 = vmatpush1.bf16.msra.mxu1 %v1174_v15 }
  0x3a   : > { %547 = vmatmul.mubr.bf16.vlgmr.msra.gmra.mrb[0].mxu0 %v1175_v16  ;;  %611 = vmatmul.mubr.bf16.vlgmr.msra.gmra.mrb[0].mxu1 %v1178_v17 }
  0x3b   : > { %1045 = vmatprep.mubr.msk.bf16.mxu0 %vm465_vm0, %v1181_v18  ;;  %1053 = vmatprep.mubr.msk.bf16.mxu1 %vm465_vm0, %v1183_v19 }
  0x42   : > { %555 = vmatmul.mubr.bf16.gmra.mrb[4].mxu0 %v1185_v20  ;;  %619 = vmatmul.mubr.bf16.gmra.mrb[4].mxu1 %v1186_v21 }
  0x43   : > { %1046 = vmatprep.mubr.msk.bf16.mxu0 %vm465_vm0, %v1187_v22  ;;  %1054 = vmatprep.mubr.msk.bf16.mxu1 %vm465_vm0, %v1189_v23 }
  0x4a   : > { %563 = vmatmul.mubr.bf16.gmra.mrb[8].mxu0 %v1191_v24  ;;  %627 = vmatmul.mubr.bf16.gmra.mrb[8].mxu1 %v1192_v25 }
  0x4b   : > { %1047 = vmatprep.mubr.msk.bf16.mxu0 %vm465_vm0, %v1193_v26  ;;  %1055 = vmatprep.mubr.msk.bf16.mxu1 %vm465_vm0, %v1195_v27 }
  0x52   : > { %571 = vmatmul.mubr.bf16.gmra.mrb[12].mxu0 %v1197_v28  ;;  %635 = vmatmul.mubr.bf16.gmra.mrb[12].mxu1 %v1198_v29 }
  0x53   : > { %1048 = vmatprep.mubr.msk.bf16.mxu0 %vm465_vm0, %v1199_v30  ;;  %1056 = vmatprep.mubr.msk.bf16.mxu1 %vm465_vm0, %v1201_v31 }
  0x5a   : > { %579 = vmatmul.mubr.bf16.gmra.mrb[16].mxu0 %v1203_v32  ;;  %643 = vmatmul.mubr.bf16.gmra.mrb[16].mxu1 %v1204_v33 }
  0x5b   : > { %1049 = vmatprep.mubr.msk.bf16.mxu0 %vm465_vm0, %v1205_v34  ;;  %1057 = vmatprep.mubr.msk.bf16.mxu1 %vm465_vm0, %v1207_v35 }
  0x62   : > { %587 = vmatmul.mubr.bf16.gmra.mrb[20].mxu0 %v1209_v36  ;;  %651 = vmatmul.mubr.bf16.gmra.mrb[20].mxu1 %v1210_v37 }
  0x63   : > { %1050 = vmatprep.mubr.msk.bf16.mxu0 %vm465_vm0, %v1211_v38  ;;  %1058 = vmatprep.mubr.msk.bf16.mxu1 %vm465_vm0, %v1213_v39 }
  0x6a   : > { %595 = vmatmul.mubr.bf16.gmra.mrb[24].mxu0 %v1215_v40  ;;  %659 = vmatmul.mubr.bf16.gmra.mrb[24].mxu1 %v1216_v41 }
  0x6b   : > { %1051 = vmatprep.mubr.msk.bf16.mxu0 %vm465_vm0, %v1217_v42  ;;  %1059 = vmatprep.mubr.msk.bf16.mxu1 %vm465_vm0, %v1219_v43 }
  0x72   : > { %603 = vmatmul.mubr.bf16.gmra.mrb[28].mxu0 %v1221_v44  ;;  %667 = vmatmul.mubr.bf16.gmra.mrb[28].mxu1 %v1222_v45 }
 0x10d   : > { %v548_v47 = vpop.f32.mrb[0].mxu0  ;;  %v612_v48 = vpop.f32.mrb[0].mxu1 }
 0x10e   : > { %v549_v49 = vadd.f32 %v1384_v46, %v548_v47  ;;  %v613_v50 = vadd.f32 %v1384_v46, %v612_v48  ;;  %v550_v51 = vpop.f32.mrb[1].mxu0  ;;  %v614_v52 = vpop.f32.mrb[1].mxu1 }
 0x10f   : > { %v551_v53 = vpop.f32.mrb[2].mxu0  ;;  %v615_v54 = vpop.f32.mrb[2].mxu1 }
 0x110   : > { %vm675_vm1 = vcmp.ge.f32.partialorder %v549_v49, 0.0  ;;  %v707_v55 = vmul.f32 0.2, %v549_v49  ;;  %vm691_vm2 = vcmp.ge.f32.partialorder %v613_v50, 0.0  ;;  %v723_v56 = vmul.f32 0.2, %v613_v50 }
 0x111   : > { %v552_v57 = vadd.f32 %v1384_v46, %v551_v53  ;;  %v616_v58 = vadd.f32 %v1384_v46, %v615_v54  ;;  %v553_v59 = vpop.f32.mrb[3].mxu0  ;;  %v617_v60 = vpop.f32.mrb[3].mxu1 }
 0x112   : > { %v739_v61 = vsel %vm675_vm1, %v549_v49, %v707_v55  ;;  %v755_v62 = vsel %vm691_vm2, %v613_v50, %v723_v56 }
 0x113   : > { %v1095_v63 = vpack.c.bf16 %v739_v61, %v739_v61  ;;  %v1111_v0 = vpack.c.bf16 %v755_v62, %v755_v62  ;;  %vm676_vm4 = vcmp.ge.f32.partialorder %v552_v57, 0.0  ;;  %v708_v1 = vmul.f32 0.2, %v552_v57 }
 0x114   : > { %vm692_vm5 = vcmp.ge.f32.partialorder %v616_v58, 0.0  ;;  %v724_v2 = vmul.f32 0.2, %v616_v58 }
 0x115   : > { %900 = vst.msk [vmem:[%s1394_s25] sm:$0xf] %vm899_vm3, %v1095_v63  ;;  %916 = vst.msk [vmem:[%s1394_s25 + $0x40] sm:$0xf] %vm899_vm3, %v1111_v0  ;;  %v740_v3 = vsel %vm676_vm4, %v552_v57, %v708_v1  ;;  %v556_v4 = vpop.f32.mrb[4].mxu0  ;;  %v620_v5 = vpop.f32.mrb[4].mxu1 }
 0x116   : > { %v1096_v6 = vpack.c.bf16 %v740_v3, %v740_v3  ;;  %v756_v7 = vsel %vm692_vm5, %v616_v58, %v724_v2  ;;  %v557_v8 = vadd.f32 %v1384_v46, %v556_v4  ;;  %v621_v9 = vadd.f32 %v1384_v46, %v620_v5  ;;  %v558_v10 = vpop.f32.mrb[5].mxu0  ;;  %v622_v11 = vpop.f32.mrb[5].mxu1 }
 0x117   : > { %v1112_v12 = vpack.c.bf16 %v756_v7, %v756_v7  ;;  %v559_v13 = vpop.f32.mrb[6].mxu0  ;;  %v623_v14 = vpop.f32.mrb[6].mxu1 }
 0x118   : > { %901 = vst.msk [vmem:[%s1394_s25 + $0x4] sm:$0xf] %vm899_vm3, %v1096_v6  ;;  %vm677_vm6 = vcmp.ge.f32.partialorder %v557_v8, 0.0  ;;  %v709_v15 = vmul.f32 0.2, %v557_v8  ;;  %vm693_vm7 = vcmp.ge.f32.partialorder %v621_v9, 0.0  ;;  %v560_v17 = vadd.f32 %v1384_v46, %v559_v13 }
 0x119   : > { %v725_v16 = vmul.f32 0.2, %v621_v9  ;;  %917 = vst.msk [vmem:[%s1394_s25 + $0x44] sm:$0xf] %vm899_vm3, %v1112_v12  ;;  %v624_v18 = vadd.f32 %v1384_v46, %v623_v14  ;;  %v561_v19 = vpop.f32.mrb[7].mxu0  ;;  %v625_v20 = vpop.f32.mrb[7].mxu1 }
 0x11a   : > { %v741_v21 = vsel %vm677_vm6, %v557_v8, %v709_v15  ;;  %vm678_vm8 = vcmp.ge.f32.partialorder %v560_v17, 0.0  ;;  %v710_v25 = vmul.f32 0.2, %v560_v17 }
 0x11b   : > { %v757_v22 = vsel %vm693_vm7, %v621_v9, %v725_v16  ;;  %v1097_v23 = vpack.c.bf16 %v741_v21, %v741_v21  ;;  %vm694_vm9 = vcmp.ge.f32.partialorder %v624_v18, 0.0  ;;  %v726_v26 = vmul.f32 0.2, %v624_v18 }
 0x11c   : > { %v1113_v24 = vpack.c.bf16 %v757_v22, %v757_v22  ;;  %v742_v27 = vsel %vm678_vm8, %v560_v17, %v710_v25 }
 0x11d   : > { %902 = vst.msk [vmem:[%s1394_s25 + $0x8] sm:$0xf] %vm899_vm3, %v1097_v23  ;;  %v564_v28 = vpop.f32.mrb[8].mxu0  ;;  %v628_v29 = vpop.f32.mrb[8].mxu1  ;;  %v1098_v30 = vpack.c.bf16 %v742_v27, %v742_v27  ;;  %v758_v31 = vsel %vm694_vm9, %v624_v18, %v726_v26 }
 0x11e   : > { %918 = vst.msk [vmem:[%s1394_s25 + $0x48] sm:$0xf] %vm899_vm3, %v1113_v24  ;;  %v565_v32 = vadd.f32 %v1384_v46, %v564_v28  ;;  %v629_v33 = vadd.f32 %v1384_v46, %v628_v29  ;;  %v566_v34 = vpop.f32.mrb[9].mxu0  ;;  %v630_v35 = vpop.f32.mrb[9].mxu1  ;;  %v1114_v36 = vpack.c.bf16 %v758_v31, %v758_v31 }
 0x11f   : > { %v567_v37 = vpop.f32.mrb[10].mxu0  ;;  %v631_v38 = vpop.f32.mrb[10].mxu1  ;;  %903 = vst.msk [vmem:[%s1394_s25 + $0xc] sm:$0xf] %vm899_vm3, %v1098_v30 }
 0x120   : > { %vm679_vm10 = vcmp.ge.f32.partialorder %v565_v32, 0.0  ;;  %v711_v39 = vmul.f32 0.2, %v565_v32  ;;  %vm695_vm11 = vcmp.ge.f32.partialorder %v629_v33, 0.0  ;;  %v727_v40 = vmul.f32 0.2, %v629_v33 }
 0x121   : > { %919 = vst.msk [vmem:[%s1394_s25 + $0x4c] sm:$0xf] %vm899_vm3, %v1114_v36  ;;  %v568_v41 = vadd.f32 %v1384_v46, %v567_v37  ;;  %v632_v42 = vadd.f32 %v1384_v46, %v631_v38  ;;  %v569_v43 = vpop.f32.mrb[11].mxu0  ;;  %v633_v44 = vpop.f32.mrb[11].mxu1 }
 0x122   : > { %v743_v45 = vsel %vm679_vm10, %v565_v32, %v711_v39  ;;  %v759_v47 = vsel %vm695_vm11, %v629_v33, %v727_v40 }
 0x123   : > { %v1099_v48 = vpack.c.bf16 %v743_v45, %v743_v45  ;;  %v1115_v49 = vpack.c.bf16 %v759_v47, %v759_v47  ;;  %vm680_vm12 = vcmp.ge.f32.partialorder %v568_v41, 0.0  ;;  %v712_v50 = vmul.f32 0.2, %v568_v41 }
 0x124   : > { %vm696_vm13 = vcmp.ge.f32.partialorder %v632_v42, 0.0  ;;  %v728_v51 = vmul.f32 0.2, %v632_v42 }
 0x125   : > { %904 = vst.msk [vmem:[%s1394_s25 + $0x10] sm:$0xf] %vm899_vm3, %v1099_v48  ;;  %920 = vst.msk [vmem:[%s1394_s25 + $0x50] sm:$0xf] %vm899_vm3, %v1115_v49  ;;  %v744_v52 = vsel %vm680_vm12, %v568_v41, %v712_v50  ;;  %v572_v53 = vpop.f32.mrb[12].mxu0  ;;  %v636_v54 = vpop.f32.mrb[12].mxu1 }
 0x126   : > { %v1100_v55 = vpack.c.bf16 %v744_v52, %v744_v52  ;;  %v760_v56 = vsel %vm696_vm13, %v632_v42, %v728_v51  ;;  %v573_v57 = vadd.f32 %v1384_v46, %v572_v53  ;;  %v637_v58 = vadd.f32 %v1384_v46, %v636_v54  ;;  %v574_v59 = vpop.f32.mrb[13].mxu0  ;;  %v638_v60 = vpop.f32.mrb[13].mxu1 }
 0x127   : > { %v1116_v61 = vpack.c.bf16 %v760_v56, %v760_v56  ;;  %v575_v62 = vpop.f32.mrb[14].mxu0  ;;  %v639_v63 = vpop.f32.mrb[14].mxu1 }
 0x128   : > { %905 = vst.msk [vmem:[%s1394_s25 + $0x14] sm:$0xf] %vm899_vm3, %v1100_v55  ;;  %vm681_vm14 = vcmp.ge.f32.partialorder %v573_v57, 0.0  ;;  %v713_v0 = vmul.f32 0.2, %v573_v57  ;;  %vm697_vm15 = vcmp.ge.f32.partialorder %v637_v58, 0.0  ;;  %v576_v2 = vadd.f32 %v1384_v46, %v575_v62 }
 0x129   : > { %v729_v1 = vmul.f32 0.2, %v637_v58  ;;  %921 = vst.msk [vmem:[%s1394_s25 + $0x54] sm:$0xf] %vm899_vm3, %v1116_v61  ;;  %v640_v3 = vadd.f32 %v1384_v46, %v639_v63  ;;  %v577_v4 = vpop.f32.mrb[15].mxu0  ;;  %v641_v5 = vpop.f32.mrb[15].mxu1 }
 0x12a   : > { %v745_v6 = vsel %vm681_vm14, %v573_v57, %v713_v0  ;;  %vm682_vm0 = vcmp.ge.f32.partialorder %v576_v2, 0.0  ;;  %v714_v10 = vmul.f32 0.2, %v576_v2 }
 0x12b   : > { %v761_v7 = vsel %vm697_vm15, %v637_v58, %v729_v1  ;;  %v1101_v8 = vpack.c.bf16 %v745_v6, %v745_v6  ;;  %vm698_vm1 = vcmp.ge.f32.partialorder %v640_v3, 0.0  ;;  %v730_v11 = vmul.f32 0.2, %v640_v3 }
 0x12c   : > { %v1117_v9 = vpack.c.bf16 %v761_v7, %v761_v7  ;;  %v746_v12 = vsel %vm682_vm0, %v576_v2, %v714_v10 }
 0x12d   : > { %906 = vst.msk [vmem:[%s1394_s25 + $0x18] sm:$0xf] %vm899_vm3, %v1101_v8  ;;  %v580_v13 = vpop.f32.mrb[16].mxu0  ;;  %v644_v14 = vpop.f32.mrb[16].mxu1  ;;  %v1102_v15 = vpack.c.bf16 %v746_v12, %v746_v12  ;;  %v762_v16 = vsel %vm698_vm1, %v640_v3, %v730_v11 }
 0x12e   : > { %922 = vst.msk [vmem:[%s1394_s25 + $0x58] sm:$0xf] %vm899_vm3, %v1117_v9  ;;  %v581_v17 = vadd.f32 %v1384_v46, %v580_v13  ;;  %v645_v18 = vadd.f32 %v1384_v46, %v644_v14  ;;  %v582_v19 = vpop.f32.mrb[17].mxu0  ;;  %v646_v20 = vpop.f32.mrb[17].mxu1  ;;  %v1118_v21 = vpack.c.bf16 %v762_v16, %v762_v16 }
 0x12f   : > { %v583_v22 = vpop.f32.mrb[18].mxu0  ;;  %v647_v23 = vpop.f32.mrb[18].mxu1  ;;  %907 = vst.msk [vmem:[%s1394_s25 + $0x1c] sm:$0xf] %vm899_vm3, %v1102_v15 }
 0x130   : > { %vm683_vm2 = vcmp.ge.f32.partialorder %v581_v17, 0.0  ;;  %v715_v24 = vmul.f32 0.2, %v581_v17  ;;  %vm699_vm4 = vcmp.ge.f32.partialorder %v645_v18, 0.0  ;;  %v731_v25 = vmul.f32 0.2, %v645_v18 }
 0x131   : > { %923 = vst.msk [vmem:[%s1394_s25 + $0x5c] sm:$0xf] %vm899_vm3, %v1118_v21  ;;  %v584_v26 = vadd.f32 %v1384_v46, %v583_v22  ;;  %v648_v27 = vadd.f32 %v1384_v46, %v647_v23  ;;  %v585_v28 = vpop.f32.mrb[19].mxu0  ;;  %v649_v29 = vpop.f32.mrb[19].mxu1 }
 0x132   : > { %v747_v30 = vsel %vm683_vm2, %v581_v17, %v715_v24  ;;  %v763_v31 = vsel %vm699_vm4, %v645_v18, %v731_v25 }
 0x133   : > { %v1103_v32 = vpack.c.bf16 %v747_v30, %v747_v30  ;;  %v1119_v33 = vpack.c.bf16 %v763_v31, %v763_v31  ;;  %vm684_vm5 = vcmp.ge.f32.partialorder %v584_v26, 0.0  ;;  %v716_v34 = vmul.f32 0.2, %v584_v26 }
 0x134   : > { %vm700_vm6 = vcmp.ge.f32.partialorder %v648_v27, 0.0  ;;  %v732_v35 = vmul.f32 0.2, %v648_v27 }
 0x135   : > { %908 = vst.msk [vmem:[%s1394_s25 + $0x20] sm:$0xf] %vm899_vm3, %v1103_v32  ;;  %924 = vst.msk [vmem:[%s1394_s25 + $0x60] sm:$0xf] %vm899_vm3, %v1119_v33  ;;  %v748_v36 = vsel %vm684_vm5, %v584_v26, %v716_v34  ;;  %v588_v37 = vpop.f32.mrb[20].mxu0  ;;  %v652_v38 = vpop.f32.mrb[20].mxu1 }
 0x136   : > { %v1104_v39 = vpack.c.bf16 %v748_v36, %v748_v36  ;;  %v764_v40 = vsel %vm700_vm6, %v648_v27, %v732_v35  ;;  %v589_v41 = vadd.f32 %v1384_v46, %v588_v37  ;;  %v653_v42 = vadd.f32 %v1384_v46, %v652_v38  ;;  %v590_v43 = vpop.f32.mrb[21].mxu0  ;;  %v654_v44 = vpop.f32.mrb[21].mxu1 }
 0x137   : > { %v1120_v45 = vpack.c.bf16 %v764_v40, %v764_v40  ;;  %v591_v47 = vpop.f32.mrb[22].mxu0  ;;  %v655_v48 = vpop.f32.mrb[22].mxu1 }
 0x138   : > { %909 = vst.msk [vmem:[%s1394_s25 + $0x24] sm:$0xf] %vm899_vm3, %v1104_v39  ;;  %vm685_vm7 = vcmp.ge.f32.partialorder %v589_v41, 0.0  ;;  %v717_v49 = vmul.f32 0.2, %v589_v41  ;;  %vm701_vm8 = vcmp.ge.f32.partialorder %v653_v42, 0.0  ;;  %v592_v51 = vadd.f32 %v1384_v46, %v591_v47 }
 0x139   : > { %v733_v50 = vmul.f32 0.2, %v653_v42  ;;  %925 = vst.msk [vmem:[%s1394_s25 + $0x64] sm:$0xf] %vm899_vm3, %v1120_v45  ;;  %v656_v52 = vadd.f32 %v1384_v46, %v655_v48  ;;  %v593_v53 = vpop.f32.mrb[23].mxu0  ;;  %v657_v54 = vpop.f32.mrb[23].mxu1 }
 0x13a   : > { %v749_v55 = vsel %vm685_vm7, %v589_v41, %v717_v49  ;;  %vm686_vm9 = vcmp.ge.f32.partialorder %v592_v51, 0.0  ;;  %v718_v59 = vmul.f32 0.2, %v592_v51 }
 0x13b   : > { %v765_v56 = vsel %vm701_vm8, %v653_v42, %v733_v50  ;;  %v1105_v57 = vpack.c.bf16 %v749_v55, %v749_v55  ;;  %vm702_vm10 = vcmp.ge.f32.partialorder %v656_v52, 0.0  ;;  %v734_v60 = vmul.f32 0.2, %v656_v52 }
 0x13c   : > { %v1121_v58 = vpack.c.bf16 %v765_v56, %v765_v56  ;;  %v750_v61 = vsel %vm686_vm9, %v592_v51, %v718_v59 }
 0x13d   : > { %910 = vst.msk [vmem:[%s1394_s25 + $0x28] sm:$0xf] %vm899_vm3, %v1105_v57  ;;  %v596_v62 = vpop.f32.mrb[24].mxu0  ;;  %v660_v63 = vpop.f32.mrb[24].mxu1  ;;  %v1106_v0 = vpack.c.bf16 %v750_v61, %v750_v61  ;;  %v766_v1 = vsel %vm702_vm10, %v656_v52, %v734_v60 }
 0x13e   : > { %926 = vst.msk [vmem:[%s1394_s25 + $0x68] sm:$0xf] %vm899_vm3, %v1121_v58  ;;  %v597_v2 = vadd.f32 %v1384_v46, %v596_v62  ;;  %v661_v3 = vadd.f32 %v1384_v46, %v660_v63  ;;  %v598_v4 = vpop.f32.mrb[25].mxu0  ;;  %v662_v5 = vpop.f32.mrb[25].mxu1  ;;  %v1122_v6 = vpack.c.bf16 %v766_v1, %v766_v1 }
 0x13f   : > { %v599_v7 = vpop.f32.mrb[26].mxu0  ;;  %v663_v8 = vpop.f32.mrb[26].mxu1  ;;  %911 = vst.msk [vmem:[%s1394_s25 + $0x2c] sm:$0xf] %vm899_vm3, %v1106_v0 }
 0x140   : > { %vm687_vm11 = vcmp.ge.f32.partialorder %v597_v2, 0.0  ;;  %v719_v9 = vmul.f32 0.2, %v597_v2  ;;  %vm703_vm12 = vcmp.ge.f32.partialorder %v661_v3, 0.0  ;;  %v735_v10 = vmul.f32 0.2, %v661_v3 }
 0x141   : > { %927 = vst.msk [vmem:[%s1394_s25 + $0x6c] sm:$0xf] %vm899_vm3, %v1122_v6  ;;  %v600_v11 = vadd.f32 %v1384_v46, %v599_v7  ;;  %v664_v12 = vadd.f32 %v1384_v46, %v663_v8  ;;  %v601_v13 = vpop.f32.mrb[27].mxu0  ;;  %v665_v14 = vpop.f32.mrb[27].mxu1 }
 0x142   : > { %v751_v15 = vsel %vm687_vm11, %v597_v2, %v719_v9  ;;  %v767_v16 = vsel %vm703_vm12, %v661_v3, %v735_v10 }
 0x143   : > { %v1107_v17 = vpack.c.bf16 %v751_v15, %v751_v15  ;;  %v1123_v18 = vpack.c.bf16 %v767_v16, %v767_v16  ;;  %vm688_vm13 = vcmp.ge.f32.partialorder %v600_v11, 0.0  ;;  %v720_v19 = vmul.f32 0.2, %v600_v11 }
 0x144   : > { %vm704_vm14 = vcmp.ge.f32.partialorder %v664_v12, 0.0  ;;  %v736_v20 = vmul.f32 0.2, %v664_v12 }
 0x145   : > { %912 = vst.msk [vmem:[%s1394_s25 + $0x30] sm:$0xf] %vm899_vm3, %v1107_v17  ;;  %928 = vst.msk [vmem:[%s1394_s25 + $0x70] sm:$0xf] %vm899_vm3, %v1123_v18  ;;  %v752_v21 = vsel %vm688_vm13, %v600_v11, %v720_v19  ;;  %v604_v22 = vpop.f32.mrb[28].mxu0  ;;  %v668_v23 = vpop.f32.mrb[28].mxu1 }
 0x146   : > { %v1108_v24 = vpack.c.bf16 %v752_v21, %v752_v21  ;;  %v768_v25 = vsel %vm704_vm14, %v664_v12, %v736_v20  ;;  %v605_v26 = vadd.f32 %v1384_v46, %v604_v22  ;;  %v669_v27 = vadd.f32 %v1384_v46, %v668_v23  ;;  %v606_v28 = vpop.f32.mrb[29].mxu0  ;;  %v670_v29 = vpop.f32.mrb[29].mxu1 }
 0x147   : > { %v1124_v30 = vpack.c.bf16 %v768_v25, %v768_v25  ;;  %v607_v31 = vpop.f32.mrb[30].mxu0  ;;  %v671_v32 = vpop.f32.mrb[30].mxu1 }
 0x148   : > { %913 = vst.msk [vmem:[%s1394_s25 + $0x34] sm:$0xf] %vm899_vm3, %v1108_v24  ;;  %vm689_vm15 = vcmp.ge.f32.partialorder %v605_v26, 0.0  ;;  %v721_v33 = vmul.f32 0.2, %v605_v26  ;;  %vm705_vm0 = vcmp.ge.f32.partialorder %v669_v27, 0.0  ;;  %v608_v35 = vadd.f32 %v1384_v46, %v607_v31 }
 0x149   : > { %v737_v34 = vmul.f32 0.2, %v669_v27  ;;  %929 = vst.msk [vmem:[%s1394_s25 + $0x74] sm:$0xf] %vm899_vm3, %v1124_v30  ;;  %v672_v36 = vadd.f32 %v1384_v46, %v671_v32  ;;  %v609_v37 = vpop.f32.mrb[31].mxu0  ;;  %v673_v38 = vpop.f32.mrb[31].mxu1 }
 0x14a   : > { %v753_v39 = vsel %vm689_vm15, %v605_v26, %v721_v33  ;;  %vm690_vm1 = vcmp.ge.f32.partialorder %v608_v35, 0.0  ;;  %v722_v43 = vmul.f32 0.2, %v608_v35 }
 0x14b   : > { %v769_v40 = vsel %vm705_vm0, %v669_v27, %v737_v34  ;;  %v1109_v41 = vpack.c.bf16 %v753_v39, %v753_v39  ;;  %vm706_vm2 = vcmp.ge.f32.partialorder %v672_v36, 0.0  ;;  %v738_v44 = vmul.f32 0.2, %v672_v36 }
 0x14c   : > { %v1125_v42 = vpack.c.bf16 %v769_v40, %v769_v40  ;;  %v754_v45 = vsel %vm690_vm1, %v608_v35, %v722_v43 }
 0x14d   : > { %914 = vst.msk [vmem:[%s1394_s25 + $0x38] sm:$0xf] %vm899_vm3, %v1109_v41  ;;  %v1110_v47 = vpack.c.bf16 %v754_v45, %v754_v45  ;;  %v770_v48 = vsel %vm706_vm2, %v672_v36, %v738_v44 }
 0x14e   : > { %930 = vst.msk [vmem:[%s1394_s25 + $0x78] sm:$0xf] %vm899_vm3, %v1125_v42  ;;  %v1126_v46 = vpack.c.bf16 %v770_v48, %v770_v48 }
 0x14f   : > { %915 = vst.msk [vmem:[%s1394_s25 + $0x3c] sm:$0xf] %vm899_vm3, %v1110_v47 }
 0x150   : > { %931 = vst.msk [vmem:[%s1394_s25 + $0x7c] sm:$0xf] %vm899_vm3, %v1126_v46 }
 0x151 PF: > { %s13_s12 = sadd.s32 1, %s1229_s12  }
 0x152   : > { %p10_p4 = scmp.ge.s32.totalorder %s13_s12, 4  }
 0x154   :  { %12 = sbr.rel (!%p10_p4) target bundleno = 1 (0x1), region = 62 }

// kernel: cdcgan_d_forward.4
= control target key start
LH: loop header
LB: loop body
LE: loop exit
PB: predicated region body
PF: predicated region fallthrough
CT: control target
= control target key end

     0   :  { %vm670_vm0 = vcmask 523264   ;;  %s1771_s1 = inlined_call_operand.vmem [shape: bf16[512,64], index: 1, kind: input, shape index: {}]   ;;  %s1772_s0 = inlined_call_operand.vmem [shape: bf16[128,512], index: 0, kind: input, shape index: {}]   ;;  %s1773_s2 = inlined_call_operand.vmem [shape: f32[1,64], index: 2, kind: input, shape index: {}]   ;;  %s1774_s3 = inlined_call_operand.vmem [shape: f32[1,64], index: 3, kind: input, shape index: {}]   ;;  %s1775_s4 = inlined_call_operand.vmem [shape: f32[1,64], index: 4, kind: input, shape index: {}]   ;;  %s1776_s5 = inlined_call_operand.vmem [shape: bf16[128,64], index: 5, kind: output, shape index: {}]  }
   0x1   :  { %v1204_v0 = vld [vmem:[%s1771_s1 + $0x40] sm:$0xff]   ;;  %v1208_v4 = vld [vmem:[%s1771_s1 + $0x48] sm:$0xff]   ;;  %v1212_v8 = vld [vmem:[%s1771_s1 + $0x50] sm:$0xff]  }
   0x2   :  { %v1205_v1 = vld [vmem:[%s1771_s1 + $0xc0] sm:$0xff]   ;;  %1076 = vmatprep.subr.bf16.mxu0 %v1204_v0  ;;  %v1209_v5 = vld [vmem:[%s1771_s1 + $0xc8] sm:$0xff]   ;;  %v1213_v9 = vld [vmem:[%s1771_s1 + $0xd0] sm:$0xff]  }
   0x3   :  { %v1206_v2 = vld [vmem:[%s1771_s1] sm:$0xff]   ;;  %1140 = vmatprep.subr.bf16.mxu1 %v1205_v1  ;;  %v1210_v6 = vld [vmem:[%s1771_s1 + $0x8] sm:$0xff]   ;;  %v1214_v10 = vld [vmem:[%s1771_s1 + $0x10] sm:$0xff]  }
   0x4   :  { %v1207_v3 = vld [vmem:[%s1771_s1 + $0x80] sm:$0xff]   ;;  %1077 = vmatpush3.bf16.msra.mxu0 %v1206_v2  ;;  %v1211_v7 = vld [vmem:[%s1771_s1 + $0x88] sm:$0xff]   ;;  %v1215_v11 = vld [vmem:[%s1771_s1 + $0x90] sm:$0xff]  }
   0x5   :  { %1141 = vmatpush3.bf16.msra.mxu1 %v1207_v3  ;;  %1078 = vmatprep.subr.bf16.mxu0 %v1208_v4  ;;  %v1216_v12 = vld [vmem:[%s1771_s1 + $0x58] sm:$0xff]   ;;  %v1220_v16 = vld [vmem:[%s1771_s1 + $0x60] sm:$0xff]   ;;  %v1224_v20 = vld [vmem:[%s1771_s1 + $0x68] sm:$0xff]  }
   0x6   :  { %1142 = vmatprep.subr.bf16.mxu1 %v1209_v5  ;;  %v1217_v13 = vld [vmem:[%s1771_s1 + $0xd8] sm:$0xff]   ;;  %v1221_v17 = vld [vmem:[%s1771_s1 + $0xe0] sm:$0xff]   ;;  %v1225_v21 = vld [vmem:[%s1771_s1 + $0xe8] sm:$0xff]  }
   0x7   :  { %v1218_v14 = vld [vmem:[%s1771_s1 + $0x18] sm:$0xff]   ;;  %v1222_v18 = vld [vmem:[%s1771_s1 + $0x20] sm:$0xff]   ;;  %v1226_v22 = vld [vmem:[%s1771_s1 + $0x28] sm:$0xff]  }
   0x8   :  { %1079 = vmatpush3.bf16.msra.mxu0 %v1210_v6  ;;  %v1219_v15 = vld [vmem:[%s1771_s1 + $0x98] sm:$0xff]   ;;  %v1223_v19 = vld [vmem:[%s1771_s1 + $0xa0] sm:$0xff]   ;;  %v1227_v23 = vld [vmem:[%s1771_s1 + $0xa8] sm:$0xff]  }
   0x9   :  { %1143 = vmatpush3.bf16.msra.mxu1 %v1211_v7  ;;  %1080 = vmatprep.subr.bf16.mxu0 %v1212_v8  ;;  %v1228_v24 = vld [vmem:[%s1771_s1 + $0x70] sm:$0xff]   ;;  %v1232_v28 = vld [vmem:[%s1771_s1 + $0x78] sm:$0xff]   ;;  %v1511_v2 = vld [vmem:[%s1773_s2] ss:$0 sm:$0xff] }
   0xa   :  { %1144 = vmatprep.subr.bf16.mxu1 %v1213_v9  ;;  %v1229_v25 = vld [vmem:[%s1771_s1 + $0xf0] sm:$0xff]   ;;  %v1233_v29 = vld [vmem:[%s1771_s1 + $0xf8] sm:$0xff]  }
   0xb   :  { %v1230_v26 = vld [vmem:[%s1771_s1 + $0x30] sm:$0xff]   ;;  %v1234_v30 = vld [vmem:[%s1771_s1 + $0x38] sm:$0xff]  }
   0xc   :  { %1081 = vmatpush3.bf16.msra.mxu0 %v1214_v10  ;;  %v1231_v27 = vld [vmem:[%s1771_s1 + $0xb0] sm:$0xff]   ;;  %v1235_v31 = vld [vmem:[%s1771_s1 + $0xb8] sm:$0xff]  }
   0xd   :  { %1145 = vmatpush3.bf16.msra.mxu1 %v1215_v11  ;;  %1082 = vmatprep.subr.bf16.mxu0 %v1216_v12  ;;  %v1236_v32 = vld [vmem:[%s1772_s0] ss:$16 sps:$4 sm:$0xff]   ;;  %v1238_v33 = vld [vmem:[%s1772_s0 + $0x4] ss:$16 sps:$4 sm:$0xff]   ;;  %v1239_v34 = vld [vmem:[%s1772_s0 + $0x8] ss:$16 sps:$4 sm:$0xff]  }
   0xe   :  { %1146 = vmatprep.subr.bf16.mxu1 %v1217_v13  ;;  %v1241_v35 = vld [vmem:[%s1772_s0 + $0xc] ss:$16 sps:$4 sm:$0xff]   ;;  %508 = vmatprep.mubr.bf16.mxu0 %v1238_v33  ;;  %v1242_v36 = vld [vmem:[%s1772_s0 + $0x24] ss:$16 sps:$4 sm:$0xff]   ;;  %v1246_v38 = vld [vmem:[%s1772_s0 + $0x20] ss:$16 sps:$4 sm:$0xff]  }
   0xf   :  { %605 = vmatprep.mubr.bf16.mxu1 %v1241_v35  ;;  %v1244_v37 = vld [vmem:[%s1772_s0 + $0x2c] ss:$16 sps:$4 sm:$0xff]   ;;  %v1247_v39 = vld [vmem:[%s1772_s0 + $0x28] ss:$16 sps:$4 sm:$0xff]   ;;  %v1248_v40 = vld [vmem:[%s1772_s0 + $0x44] ss:$16 sps:$4 sm:$0xff]  }
  0x10   :  { %1083 = vmatpush3.bf16.msra.mxu0 %v1218_v14  ;;  %v1250_v41 = vld [vmem:[%s1772_s0 + $0x4c] ss:$16 sps:$4 sm:$0xff]   ;;  %v1252_v42 = vld [vmem:[%s1772_s0 + $0x40] ss:$16 sps:$4 sm:$0xff]   ;;  %v1253_v43 = vld [vmem:[%s1772_s0 + $0x48] ss:$16 sps:$4 sm:$0xff]  }
  0x11   :  { %1147 = vmatpush3.bf16.msra.mxu1 %v1219_v15  ;;  %1084 = vmatprep.subr.bf16.mxu0 %v1220_v16  ;;  %v1254_v44 = vld [vmem:[%s1772_s0 + $0x64] ss:$16 sps:$4 sm:$0xff]   ;;  %v1256_v45 = vld [vmem:[%s1772_s0 + $0x6c] ss:$16 sps:$4 sm:$0xff]   ;;  %v1258_v46 = vld [vmem:[%s1772_s0 + $0x60] ss:$16 sps:$4 sm:$0xff]  }
  0x12   :  { %1148 = vmatprep.subr.bf16.mxu1 %v1221_v17  ;;  %v1259_v47 = vld [vmem:[%s1772_s0 + $0x68] ss:$16 sps:$4 sm:$0xff]   ;;  %v1260_v48 = vld [vmem:[%s1772_s0 + $0x84] ss:$16 sps:$4 sm:$0xff]   ;;  %v1262_v49 = vld [vmem:[%s1772_s0 + $0x8c] ss:$16 sps:$4 sm:$0xff]  }
  0x13   :  { %v1264_v50 = vld [vmem:[%s1772_s0 + $0x80] ss:$16 sps:$4 sm:$0xff]   ;;  %v1265_v51 = vld [vmem:[%s1772_s0 + $0x88] ss:$16 sps:$4 sm:$0xff]   ;;  %v1266_v52 = vld [vmem:[%s1772_s0 + $0xa4] ss:$16 sps:$4 sm:$0xff]  }
  0x14   :  { %1085 = vmatpush3.bf16.msra.mxu0 %v1222_v18  ;;  %v1268_v53 = vld [vmem:[%s1772_s0 + $0xac] ss:$16 sps:$4 sm:$0xff]   ;;  %v1270_v54 = vld [vmem:[%s1772_s0 + $0xa0] ss:$16 sps:$4 sm:$0xff]   ;;  %v1271_v55 = vld [vmem:[%s1772_s0 + $0xa8] ss:$16 sps:$4 sm:$0xff]  }
  0x15   :  { %1149 = vmatpush3.bf16.msra.mxu1 %v1223_v19  ;;  %1086 = vmatprep.subr.bf16.mxu0 %v1224_v20  ;;  %v1272_v56 = vld [vmem:[%s1772_s0 + $0xc4] ss:$16 sps:$4 sm:$0xff]   ;;  %v1274_v57 = vld [vmem:[%s1772_s0 + $0xcc] ss:$16 sps:$4 sm:$0xff]   ;;  %v1276_v58 = vld [vmem:[%s1772_s0 + $0xc0] ss:$16 sps:$4 sm:$0xff]  }
  0x16   :  { %1150 = vmatprep.subr.bf16.mxu1 %v1225_v21  ;;  %v1277_v59 = vld [vmem:[%s1772_s0 + $0xc8] ss:$16 sps:$4 sm:$0xff]   ;;  %v1278_v60 = vld [vmem:[%s1772_s0 + $0xe4] ss:$16 sps:$4 sm:$0xff]   ;;  %v1280_v61 = vld [vmem:[%s1772_s0 + $0xec] ss:$16 sps:$4 sm:$0xff]  }
  0x17   :  { %v1282_v62 = vld [vmem:[%s1772_s0 + $0xe0] ss:$16 sps:$4 sm:$0xff]   ;;  %v1283_v63 = vld [vmem:[%s1772_s0 + $0xe8] ss:$16 sps:$4 sm:$0xff]  }
  0x18   :  { %1087 = vmatpush3.bf16.msra.mxu0 %v1226_v22 }
  0x19   :  { %1151 = vmatpush3.bf16.msra.mxu1 %v1227_v23  ;;  %1088 = vmatprep.subr.bf16.mxu0 %v1228_v24 }
  0x1a   :  { %1152 = vmatprep.subr.bf16.mxu1 %v1229_v25 }
  0x1c   :  { %1089 = vmatpush3.bf16.msra.mxu0 %v1230_v26 }
  0x1d   :  { %1153 = vmatpush3.bf16.msra.mxu1 %v1231_v27  ;;  %1090 = vmatprep.subr.bf16.mxu0 %v1232_v28 }
  0x1e   :  { %1154 = vmatprep.subr.bf16.mxu1 %v1233_v29 }
  0x20   :  { %1091 = vmatpush3.bf16.msra.mxu0 %v1234_v30 }
  0x21   :  { %1155 = vmatpush3.bf16.msra.mxu1 %v1235_v31 }
  0x23   :  { %509 = vmatmul.mubr.bf16.vlgmr.msra.gmra.mrb[0].mxu0 %v1236_v32 }
  0x24   :  { %606 = vmatmul.mubr.bf16.vlgmr.msra.gmra.mrb[0].mxu1 %v1239_v34  ;;  %516 = vmatprep.mubr.bf16.mxu0 %v1242_v36 }
  0x25   :  { %613 = vmatprep.mubr.bf16.mxu1 %v1244_v37 }
  0x2b   :  { %517 = vmatmul.mubr.bf16.gmra.mrb[4].mxu0 %v1246_v38 }
  0x2c   :  { %614 = vmatmul.mubr.bf16.gmra.mrb[4].mxu1 %v1247_v39  ;;  %524 = vmatprep.mubr.bf16.mxu0 %v1248_v40 }
  0x2d   :  { %621 = vmatprep.mubr.bf16.mxu1 %v1250_v41 }
  0x33   :  { %525 = vmatmul.mubr.bf16.gmra.mrb[8].mxu0 %v1252_v42 }
  0x34   :  { %622 = vmatmul.mubr.bf16.gmra.mrb[8].mxu1 %v1253_v43  ;;  %532 = vmatprep.mubr.bf16.mxu0 %v1254_v44 }
  0x35   :  { %629 = vmatprep.mubr.bf16.mxu1 %v1256_v45 }
  0x3b   :  { %533 = vmatmul.mubr.bf16.gmra.mrb[12].mxu0 %v1258_v46 }
  0x3c   :  { %630 = vmatmul.mubr.bf16.gmra.mrb[12].mxu1 %v1259_v47  ;;  %540 = vmatprep.mubr.bf16.mxu0 %v1260_v48 }
  0x3d   :  { %637 = vmatprep.mubr.bf16.mxu1 %v1262_v49 }
  0x43   :  { %541 = vmatmul.mubr.bf16.gmra.mrb[16].mxu0 %v1264_v50 }
  0x44   :  { %638 = vmatmul.mubr.bf16.gmra.mrb[16].mxu1 %v1265_v51  ;;  %548 = vmatprep.mubr.bf16.mxu0 %v1266_v52 }
  0x45   :  { %645 = vmatprep.mubr.bf16.mxu1 %v1268_v53 }
  0x4b   :  { %549 = vmatmul.mubr.bf16.gmra.mrb[20].mxu0 %v1270_v54 }
  0x4c   :  { %646 = vmatmul.mubr.bf16.gmra.mrb[20].mxu1 %v1271_v55  ;;  %556 = vmatprep.mubr.bf16.mxu0 %v1272_v56 }
  0x4d   :  { %653 = vmatprep.mubr.bf16.mxu1 %v1274_v57 }
  0x53   :  { %557 = vmatmul.mubr.bf16.gmra.mrb[24].mxu0 %v1276_v58 }
  0x54   :  { %654 = vmatmul.mubr.bf16.gmra.mrb[24].mxu1 %v1277_v59  ;;  %564 = vmatprep.mubr.bf16.mxu0 %v1278_v60 }
  0x55   :  { %661 = vmatprep.mubr.bf16.mxu1 %v1280_v61 }
  0x5b   :  { %565 = vmatmul.mubr.bf16.gmra.mrb[28].mxu0 %v1282_v62 }
  0x5c   :  { %662 = vmatmul.mubr.bf16.gmra.mrb[28].mxu1 %v1283_v63 }
  0xf6   :  { %v1092_v0 = vpop.f32.mrb[0].mxu0 }
  0xf7   :  { %v1156_v1 = vpop.f32.mrb[0].mxu1  ;;  %v1093_v3 = vpop.f32.mrb[1].mxu0 }
  0xf8   :  { %v1094_v4 = vadd.f32 %v1093_v3, %v1092_v0  ;;  %v1157_v5 = vpop.f32.mrb[1].mxu1  ;;  %v1095_v6 = vpop.f32.mrb[2].mxu0 }
  0xf9   :  { %v1158_v7 = vadd.f32 %v1157_v5, %v1156_v1  ;;  %v1159_v8 = vpop.f32.mrb[2].mxu1  ;;  %v1096_v9 = vpop.f32.mrb[3].mxu0 }
  0xfa   :  { %v511_v10 = vadd.f32 %v1094_v4, %v1511_v2  ;;  %v1097_v11 = vadd.f32 %v1096_v9, %v1095_v6  ;;  %v1160_v12 = vpop.f32.mrb[3].mxu1 }
  0xfb   :  { %v1161_v13 = vadd.f32 %v1160_v12, %v1159_v8 }
  0xfc   :  { %v1514_v14 = vadd.f32 %v1158_v7, %v511_v10  ;;  %v514_v15 = vadd.f32 %v1097_v11, %v1511_v2 }
  0xfe   :  { %v1517_v16 = vadd.f32 %v1161_v13, %v514_v15  ;;  %v1098_v17 = vpop.f32.mrb[4].mxu0  ;;  %v671_v20 = vsel %vm670_vm0, %v1514_v14, 0.0 }
  0xff   :  { %v1162_v18 = vpop.f32.mrb[4].mxu1  ;;  %v1099_v19 = vpop.f32.mrb[5].mxu0 }
 0x100   :  { %v672_v21 = vsel %vm670_vm0, %v1517_v16, 0.0  ;;  %v1100_v22 = vadd.f32 %v1099_v19, %v1098_v17  ;;  %v1163_v23 = vpop.f32.mrb[5].mxu1  ;;  %v1101_v24 = vpop.f32.mrb[6].mxu0 }
 0x101   :  { %v673_v25 = vadd.f32 %v672_v21, %v671_v20  ;;  %v1164_v26 = vadd.f32 %v1163_v23, %v1162_v18  ;;  %v1165_v27 = vpop.f32.mrb[6].mxu1  ;;  %v1102_v28 = vpop.f32.mrb[7].mxu0 }
 0x102   :  { %v519_v29 = vadd.f32 %v1100_v22, %v1511_v2  ;;  %v1103_v30 = vadd.f32 %v1102_v28, %v1101_v24  ;;  %v1166_v31 = vpop.f32.mrb[7].mxu1 }
 0x103   :  { %v1167_v32 = vadd.f32 %v1166_v31, %v1165_v27 }
 0x104   :  { %v1524_v33 = vadd.f32 %v1164_v26, %v519_v29  ;;  %v522_v34 = vadd.f32 %v1103_v30, %v1511_v2 }
 0x106   :  { %v674_v35 = vsel %vm670_vm0, %v1524_v33, 0.0  ;;  %v1529_v36 = vadd.f32 %v1167_v32, %v522_v34  ;;  %v1104_v37 = vpop.f32.mrb[8].mxu0 }
 0x107   :  { %v675_v38 = vadd.f32 %v674_v35, %v673_v25  ;;  %v1168_v39 = vpop.f32.mrb[8].mxu1  ;;  %v1105_v40 = vpop.f32.mrb[9].mxu0 }
 0x108   :  { %v676_v41 = vsel %vm670_vm0, %v1529_v36, 0.0  ;;  %v1106_v42 = vadd.f32 %v1105_v40, %v1104_v37  ;;  %v1169_v43 = vpop.f32.mrb[9].mxu1  ;;  %v1107_v44 = vpop.f32.mrb[10].mxu0 }
 0x109   :  { %v677_v45 = vadd.f32 %v676_v41, %v675_v38  ;;  %v1170_v46 = vadd.f32 %v1169_v43, %v1168_v39  ;;  %v1171_v47 = vpop.f32.mrb[10].mxu1  ;;  %v1108_v48 = vpop.f32.mrb[11].mxu0 }
 0x10a   :  { %v527_v49 = vadd.f32 %v1106_v42, %v1511_v2  ;;  %v1109_v50 = vadd.f32 %v1108_v48, %v1107_v44  ;;  %v1172_v51 = vpop.f32.mrb[11].mxu1 }
 0x10b   :  { %v1173_v52 = vadd.f32 %v1172_v51, %v1171_v47 }
 0x10c   :  { %v1534_v53 = vadd.f32 %v1170_v46, %v527_v49  ;;  %v530_v54 = vadd.f32 %v1109_v50, %v1511_v2 }
 0x10e   :  { %v678_v55 = vsel %vm670_vm0, %v1534_v53, 0.0  ;;  %v1539_v56 = vadd.f32 %v1173_v52, %v530_v54  ;;  %v1110_v57 = vpop.f32.mrb[12].mxu0 }
 0x10f   :  { %v679_v58 = vadd.f32 %v678_v55, %v677_v45  ;;  %v1174_v59 = vpop.f32.mrb[12].mxu1  ;;  %v1111_v60 = vpop.f32.mrb[13].mxu0 }
 0x110   :  { %v680_v61 = vsel %vm670_vm0, %v1539_v56, 0.0  ;;  %v1112_v62 = vadd.f32 %v1111_v60, %v1110_v57  ;;  %v1175_v63 = vpop.f32.mrb[13].mxu1  ;;  %v1113_v0 = vpop.f32.mrb[14].mxu0 }
 0x111   :  { %v681_v1 = vadd.f32 %v680_v61, %v679_v58  ;;  %v1176_v3 = vadd.f32 %v1175_v63, %v1174_v59  ;;  %v1177_v4 = vpop.f32.mrb[14].mxu1  ;;  %v1114_v5 = vpop.f32.mrb[15].mxu0 }
 0x112   :  { %v535_v6 = vadd.f32 %v1112_v62, %v1511_v2  ;;  %v1115_v7 = vadd.f32 %v1114_v5, %v1113_v0  ;;  %v1178_v8 = vpop.f32.mrb[15].mxu1 }
 0x113   :  { %v1179_v9 = vadd.f32 %v1178_v8, %v1177_v4 }
 0x114   :  { %v1544_v10 = vadd.f32 %v1176_v3, %v535_v6  ;;  %v538_v11 = vadd.f32 %v1115_v7, %v1511_v2 }
 0x116   :  { %v682_v12 = vsel %vm670_vm0, %v1544_v10, 0.0  ;;  %v1549_v13 = vadd.f32 %v1179_v9, %v538_v11  ;;  %v1116_v15 = vpop.f32.mrb[16].mxu0 }
 0x117   :  { %v683_v17 = vadd.f32 %v682_v12, %v681_v1  ;;  %v1180_v18 = vpop.f32.mrb[16].mxu1  ;;  %v1117_v19 = vpop.f32.mrb[17].mxu0 }
 0x118   :  { %v684_v20 = vsel %vm670_vm0, %v1549_v13, 0.0  ;;  %v1118_v21 = vadd.f32 %v1117_v19, %v1116_v15  ;;  %v1181_v22 = vpop.f32.mrb[17].mxu1  ;;  %v1119_v23 = vpop.f32.mrb[18].mxu0 }
 0x119   :  { %v685_v24 = vadd.f32 %v684_v20, %v683_v17  ;;  %v1182_v25 = vadd.f32 %v1181_v22, %v1180_v18  ;;  %v1183_v26 = vpop.f32.mrb[18].mxu1  ;;  %v1120_v27 = vpop.f32.mrb[19].mxu0 }
 0x11a   :  { %v543_v28 = vadd.f32 %v1118_v21, %v1511_v2  ;;  %v1121_v29 = vadd.f32 %v1120_v27, %v1119_v23  ;;  %v1184_v30 = vpop.f32.mrb[19].mxu1 }
 0x11b   :  { %v1185_v31 = vadd.f32 %v1184_v30, %v1183_v26 }
 0x11c   :  { %v1554_v32 = vadd.f32 %v1182_v25, %v543_v28  ;;  %v546_v34 = vadd.f32 %v1121_v29, %v1511_v2 }
 0x11e   :  { %v686_v35 = vsel %vm670_vm0, %v1554_v32, 0.0  ;;  %v1559_v37 = vadd.f32 %v1185_v31, %v546_v34  ;;  %v1122_v38 = vpop.f32.mrb[20].mxu0 }
 0x11f   :  { %v687_v39 = vadd.f32 %v686_v35, %v685_v24  ;;  %v1186_v40 = vpop.f32.mrb[20].mxu1  ;;  %v1123_v41 = vpop.f32.mrb[21].mxu0 }
 0x120   :  { %v688_v42 = vsel %vm670_vm0, %v1559_v37, 0.0  ;;  %v1124_v43 = vadd.f32 %v1123_v41, %v1122_v38  ;;  %v1187_v44 = vpop.f32.mrb[21].mxu1  ;;  %v1125_v45 = vpop.f32.mrb[22].mxu0 }
 0x121   :  { %v689_v46 = vadd.f32 %v688_v42, %v687_v39  ;;  %v1188_v47 = vadd.f32 %v1187_v44, %v1186_v40  ;;  %v1189_v48 = vpop.f32.mrb[22].mxu1  ;;  %v1126_v49 = vpop.f32.mrb[23].mxu0 }
 0x122   :  { %v551_v50 = vadd.f32 %v1124_v43, %v1511_v2  ;;  %v1127_v51 = vadd.f32 %v1126_v49, %v1125_v45  ;;  %v1190_v52 = vpop.f32.mrb[23].mxu1 }
 0x123   :  { %v1191_v54 = vadd.f32 %v1190_v52, %v1189_v48 }
 0x124   :  { %v1564_v55 = vadd.f32 %v1188_v47, %v551_v50  ;;  %v554_v57 = vadd.f32 %v1127_v51, %v1511_v2 }
 0x126   :  { %v690_v58 = vsel %vm670_vm0, %v1564_v55, 0.0  ;;  %v651_v59 = vadd.f32 %v1191_v54, %v554_v57  ;;  %v1128_v60 = vpop.f32.mrb[24].mxu0 }
 0x127   :  { %v691_v61 = vadd.f32 %v690_v58, %v689_v46  ;;  %v1192_v62 = vpop.f32.mrb[24].mxu1  ;;  %v1129_v63 = vpop.f32.mrb[25].mxu0 }
 0x128   :  { %v692_v0 = vsel %vm670_vm0, %v651_v59, 0.0  ;;  %v1130_v1 = vadd.f32 %v1129_v63, %v1128_v60  ;;  %v1193_v3 = vpop.f32.mrb[25].mxu1  ;;  %v1131_v4 = vpop.f32.mrb[26].mxu0 }
 0x129   :  { %v693_v5 = vadd.f32 %v692_v0, %v691_v61  ;;  %v1194_v6 = vadd.f32 %v1193_v3, %v1192_v62  ;;  %v1195_v7 = vpop.f32.mrb[26].mxu1  ;;  %v1132_v8 = vpop.f32.mrb[27].mxu0 }
 0x12a   :  { %v559_v9 = vadd.f32 %v1130_v1, %v1511_v2  ;;  %v1133_v11 = vadd.f32 %v1132_v8, %v1131_v4  ;;  %v1196_v12 = vpop.f32.mrb[27].mxu1 }
 0x12b   :  { %v1197_v15 = vadd.f32 %v1196_v12, %v1195_v7 }
 0x12c   :  { %v656_v17 = vadd.f32 %v1194_v6, %v559_v9  ;;  %v562_v18 = vadd.f32 %v1133_v11, %v1511_v2 }
 0x12e   :  { %v694_v19 = vsel %vm670_vm0, %v656_v17, 0.0  ;;  %v659_v20 = vadd.f32 %v1197_v15, %v562_v18  ;;  %v1134_v21 = vpop.f32.mrb[28].mxu0 }
 0x12f   :  { %v695_v22 = vadd.f32 %v694_v19, %v693_v5  ;;  %v1198_v23 = vpop.f32.mrb[28].mxu1  ;;  %v1135_v24 = vpop.f32.mrb[29].mxu0 }
 0x130   :  { %v696_v25 = vsel %vm670_vm0, %v659_v20, 0.0  ;;  %v1136_v26 = vadd.f32 %v1135_v24, %v1134_v21  ;;  %v1199_v27 = vpop.f32.mrb[29].mxu1  ;;  %v1137_v28 = vpop.f32.mrb[30].mxu0 }
 0x131   :  { %v697_v29 = vadd.f32 %v696_v25, %v695_v22  ;;  %v1200_v30 = vadd.f32 %v1199_v27, %v1198_v23  ;;  %v1201_v31 = vpop.f32.mrb[30].mxu1  ;;  %v1138_v34 = vpop.f32.mrb[31].mxu0 }
 0x132   :  { %v567_v35 = vadd.f32 %v1136_v26, %v1511_v2  ;;  %v1139_v38 = vadd.f32 %v1138_v34, %v1137_v28  ;;  %v1202_v39 = vpop.f32.mrb[31].mxu1 }
 0x133   :  { %v1203_v40 = vadd.f32 %v1202_v39, %v1201_v31 }
 0x134   :  { %v664_v41 = vadd.f32 %v1200_v30, %v567_v35  ;;  %v570_v42 = vadd.f32 %v1139_v38, %v1511_v2 }
 0x136   :  { %v698_v43 = vsel %vm670_vm0, %v664_v41, 0.0  ;;  %v667_v44 = vadd.f32 %v1203_v40, %v570_v42 }
 0x137   :  { %v699_v45 = vadd.f32 %v698_v43, %v697_v29 }
 0x138   :  { %v700_v46 = vsel %vm670_vm0, %v667_v44, 0.0 }
 0x139   :  { %v701_v47 = vadd.f32 %v700_v46, %v699_v45 }
 0x13b   :  { %v702_v48 = vrot.slane %v701_v47, 4 }
 0x13d   :  { %v703_v49 = vadd.f32 %v702_v48, %v701_v47 }
 0x13f   :  { %v704_v50 = vrot.slane %v703_v49, 2 }
 0x141   :  { %v705_v51 = vadd.f32 %v704_v50, %v703_v49 }
 0x143   :  { %v706_v52 = vrot.slane %v705_v51, 1 }
 0x145   :  { %v707_v54 = vadd.f32 %v706_v52, %v705_v51 }
 0x147   :  { %v709_v57 = vmul.f32 0.0078125, %v707_v54 }
 0x149   :  { %v1579_v58 = vsub.f32 %v1514_v14, %v709_v57  ;;  %v1582_v60 = vsub.f32 %v1517_v16, %v709_v57  ;;  %v1585_v2 = vsub.f32 %v1524_v33, %v709_v57  ;;  %v1588_v61 = vsub.f32 %v1529_v36, %v709_v57 }
 0x14a   :  { %v1591_v62 = vsub.f32 %v1534_v53, %v709_v57  ;;  %v1594_v63 = vsub.f32 %v1539_v56, %v709_v57  ;;  %v1597_v0 = vsub.f32 %v1544_v10, %v709_v57  ;;  %v1600_v14 = vsub.f32 %v1549_v13, %v709_v57 }
 0x14b   :  { %v1603_v16 = vsub.f32 %v1554_v32, %v709_v57  ;;  %v1606_v33 = vsub.f32 %v1559_v37, %v709_v57  ;;  %v1609_v36 = vsub.f32 %v1564_v55, %v709_v57  ;;  %v1611_v53 = vsub.f32 %v651_v59, %v709_v57 }
 0x14c   :  { %v1613_v1 = vsub.f32 %v656_v17, %v709_v57  ;;  %v1615_v56 = vsub.f32 %v659_v20, %v709_v57  ;;  %v1617_v10 = vsub.f32 %v664_v41, %v709_v57  ;;  %v1619_v3 = vsub.f32 %v667_v44, %v709_v57 }
 0x14d   :  { %v726_v13 = vmul.f32 %v1579_v58, %v1579_v58  ;;  %v727_v32 = vmul.f32 %v1582_v60, %v1582_v60  ;;  %v728_v37 = vmul.f32 %v1585_v2, %v1585_v2  ;;  %v729_v55 = vmul.f32 %v1588_v61, %v1588_v61 }
 0x14e   :  { %v730_v6 = vmul.f32 %v1591_v62, %v1591_v62  ;;  %v731_v9 = vmul.f32 %v1594_v63, %v1594_v63  ;;  %v732_v15 = vmul.f32 %v1597_v0, %v1597_v0  ;;  %v733_v19 = vmul.f32 %v1600_v14, %v1600_v14 }
 0x14f   :  { %v742_v59 = vsel %vm670_vm0, %v726_v13, 0.0  ;;  %v743_v4 = vsel %vm670_vm0, %v727_v32, 0.0  ;;  %v745_v7 = vsel %vm670_vm0, %v728_v37, 0.0  ;;  %v747_v11 = vsel %vm670_vm0, %v729_v55, 0.0 }
 0x150   :  { %v744_v5 = vadd.f32 %v743_v4, %v742_v59  ;;  %v749_v17 = vsel %vm670_vm0, %v730_v6, 0.0  ;;  %v751_v20 = vsel %vm670_vm0, %v731_v9, 0.0  ;;  %v734_v22 = vmul.f32 %v1603_v16, %v1603_v16 }
 0x151   :  { %v753_v23 = vsel %vm670_vm0, %v732_v15, 0.0  ;;  %v735_v25 = vmul.f32 %v1606_v33, %v1606_v33  ;;  %v755_v26 = vsel %vm670_vm0, %v733_v19, 0.0  ;;  %v736_v28 = vmul.f32 %v1609_v36, %v1609_v36  ;;  %v1042_v19 = vld [vmem:[%s1774_s3] ss:$0 sm:$0xff] }
 0x152   :  { %v746_v8 = vadd.f32 %v745_v7, %v744_v5  ;;  %v757_v29 = vsel %vm670_vm0, %v734_v22, 0.0  ;;  %v737_v31 = vmul.f32 %v1611_v53, %v1611_v53  ;;  %v738_v38 = vmul.f32 %v1613_v1, %v1613_v1 }
 0x153   :  { %v759_v34 = vsel %vm670_vm0, %v735_v25, 0.0  ;;  %v761_v39 = vsel %vm670_vm0, %v736_v28, 0.0  ;;  %v739_v41 = vmul.f32 %v1615_v56, %v1615_v56  ;;  %v740_v44 = vmul.f32 %v1617_v10, %v1617_v10 }
 0x154   :  { %v748_v12 = vadd.f32 %v747_v11, %v746_v8  ;;  %v763_v42 = vsel %vm670_vm0, %v737_v31, 0.0  ;;  %v765_v45 = vsel %vm670_vm0, %v738_v38, 0.0  ;;  %v741_v47 = vmul.f32 %v1619_v3, %v1619_v3 }
 0x155   :  { %v767_v48 = vsel %vm670_vm0, %v739_v41, 0.0  ;;  %v769_v50 = vsel %vm670_vm0, %v740_v44, 0.0 }
 0x156   :  { %v750_v18 = vadd.f32 %v749_v17, %v748_v12  ;;  %v771_v52 = vsel %vm670_vm0, %v741_v47, 0.0 }
 0x158   :  { %v752_v21 = vadd.f32 %v751_v20, %v750_v18 }
 0x15a   :  { %v754_v24 = vadd.f32 %v753_v23, %v752_v21 }
 0x15c   :  { %v756_v27 = vadd.f32 %v755_v26, %v754_v24 }
 0x15e   :  { %v758_v30 = vadd.f32 %v757_v29, %v756_v27 }
 0x160   :  { %v760_v35 = vadd.f32 %v759_v34, %v758_v30 }
 0x162   :  { %v762_v40 = vadd.f32 %v761_v39, %v760_v35 }
 0x164   :  { %v764_v43 = vadd.f32 %v763_v42, %v762_v40 }
 0x166   :  { %v766_v46 = vadd.f32 %v765_v45, %v764_v43 }
 0x168   :  { %v768_v49 = vadd.f32 %v767_v48, %v766_v46 }
 0x16a   :  { %v770_v51 = vadd.f32 %v769_v50, %v768_v49 }
 0x16c   :  { %v772_v54 = vadd.f32 %v771_v52, %v770_v51 }
 0x16e   :  { %v773_v57 = vrot.slane %v772_v54, 4 }
 0x170   :  { %v774_v13 = vadd.f32 %v773_v57, %v772_v54 }
 0x172   :  { %v775_v32 = vrot.slane %v774_v13, 2 }
 0x174   :  { %v776_v37 = vadd.f32 %v775_v32, %v774_v13 }
 0x176   :  { %v777_v55 = vrot.slane %v776_v37, 1 }
 0x178   :  { %v778_v59 = vadd.f32 %v777_v55, %v776_v37 }
 0x17a   :  { %v779_v4 = vmul.f32 0.0078125, %v778_v59 }
 0x17c   :  { %v780_v5 = vadd.f32 1e-05, %v779_v4 }
 0x17e   :  { %1284 = vrsqrt.f32 %v780_v5 }
 0x188   :  { %v1285_v6 = vpop.eup %1284 }
 0x189   :  { %v782_v7 = vmul.f32 %v1285_v6, %v1579_v58  ;;  %v783_v8 = vmul.f32 %v1285_v6, %v1582_v60  ;;  %v784_v9 = vmul.f32 %v1285_v6, %v1585_v2  ;;  %v785_v11 = vmul.f32 %v1285_v6, %v1588_v61 }
 0x18a   :  { %v786_v12 = vmul.f32 %v1285_v6, %v1591_v62  ;;  %v787_v15 = vmul.f32 %v1285_v6, %v1594_v63  ;;  %v788_v17 = vmul.f32 %v1285_v6, %v1597_v0  ;;  %v789_v18 = vmul.f32 %v1285_v6, %v1600_v14 }
 0x18b   :  { %v790_v58 = vmul.f32 %v1285_v6, %v1603_v16  ;;  %v791_v60 = vmul.f32 %v1285_v6, %v1606_v33  ;;  %v792_v2 = vmul.f32 %v1285_v6, %v1609_v36  ;;  %v793_v61 = vmul.f32 %v1285_v6, %v1611_v53  ;;  %v1043_v36 = vld [vmem:[%s1775_s4] ss:$0 sm:$0xff] }
 0x18c   :  { %v794_v62 = vmul.f32 %v1285_v6, %v1613_v1  ;;  %v795_v63 = vmul.f32 %v1285_v6, %v1615_v56  ;;  %v796_v0 = vmul.f32 %v1285_v6, %v1617_v10  ;;  %v797_v14 = vmul.f32 %v1285_v6, %v1619_v3 }
 0x18d   :  { %v805_v20 = vmul.f32 %v1042_v19, %v782_v7  ;;  %v806_v21 = vmul.f32 %v1042_v19, %v783_v8  ;;  %v807_v22 = vmul.f32 %v1042_v19, %v784_v9  ;;  %v808_v23 = vmul.f32 %v1042_v19, %v785_v11 }
 0x18e   :  { %v809_v24 = vmul.f32 %v1042_v19, %v786_v12  ;;  %v810_v16 = vmul.f32 %v1042_v19, %v787_v15  ;;  %v811_v25 = vmul.f32 %v1042_v19, %v788_v17  ;;  %v812_v33 = vmul.f32 %v1042_v19, %v789_v18 }
 0x18f   :  { %v813_v53 = vmul.f32 %v1042_v19, %v790_v58  ;;  %v814_v1 = vmul.f32 %v1042_v19, %v791_v60  ;;  %v815_v26 = vmul.f32 %v1042_v19, %v792_v2  ;;  %v816_v56 = vmul.f32 %v1042_v19, %v793_v61 }
 0x190   :  { %v817_v27 = vmul.f32 %v1042_v19, %v794_v62  ;;  %v818_v10 = vmul.f32 %v1042_v19, %v795_v63  ;;  %v819_v28 = vmul.f32 %v1042_v19, %v796_v0  ;;  %v820_v3 = vmul.f32 %v1042_v19, %v797_v14 }
 0x191   :  { %v828_v29 = vadd.f32 %v1043_v36, %v805_v20  ;;  %v829_v30 = vadd.f32 %v1043_v36, %v806_v21  ;;  %v830_v31 = vadd.f32 %v1043_v36, %v807_v22  ;;  %v831_v34 = vadd.f32 %v1043_v36, %v808_v23 }
 0x192   :  { %v832_v35 = vadd.f32 %v1043_v36, %v809_v24  ;;  %v833_v38 = vadd.f32 %v1043_v36, %v810_v16  ;;  %v834_v39 = vadd.f32 %v1043_v36, %v811_v25  ;;  %v835_v40 = vadd.f32 %v1043_v36, %v812_v33 }
 0x193   :  { %v836_v41 = vadd.f32 %v1043_v36, %v813_v53  ;;  %v837_v42 = vadd.f32 %v1043_v36, %v814_v1  ;;  %v838_v43 = vadd.f32 %v1043_v36, %v815_v26  ;;  %v839_v44 = vadd.f32 %v1043_v36, %v816_v56 }
 0x194   :  { %v840_v45 = vadd.f32 %v1043_v36, %v817_v27  ;;  %v841_v46 = vadd.f32 %v1043_v36, %v818_v10  ;;  %v842_v47 = vadd.f32 %v1043_v36, %v819_v28  ;;  %v843_v48 = vadd.f32 %v1043_v36, %v820_v3 }
 0x195   :  { %vm845_vm2 = vcmp.ge.f32.partialorder %v829_v30, 0.0  ;;  %vm846_vm3 = vcmp.ge.f32.partialorder %v830_v31, 0.0  ;;  %vm847_vm4 = vcmp.ge.f32.partialorder %v831_v34, 0.0  ;;  %vm848_vm5 = vcmp.ge.f32.partialorder %v832_v35, 0.0 }
 0x196   :  { %vm849_vm6 = vcmp.ge.f32.partialorder %v833_v38, 0.0  ;;  %vm851_vm8 = vcmp.ge.f32.partialorder %v835_v40, 0.0  ;;  %vm852_vm9 = vcmp.ge.f32.partialorder %v836_v41, 0.0  ;;  %vm853_vm10 = vcmp.ge.f32.partialorder %v837_v42, 0.0 }
 0x197   :  { %vm854_vm11 = vcmp.ge.f32.partialorder %v838_v43, 0.0  ;;  %vm855_vm12 = vcmp.ge.f32.partialorder %v839_v44, 0.0  ;;  %vm856_vm13 = vcmp.ge.f32.partialorder %v840_v45, 0.0  ;;  %vm857_vm14 = vcmp.ge.f32.partialorder %v841_v46, 0.0 }
 0x198   :  { %vm858_vm15 = vcmp.ge.f32.partialorder %v842_v47, 0.0  ;;  %vm859_vm0 = vcmp.ge.f32.partialorder %v843_v48, 0.0  ;;  %v860_v49 = vmul.f32 0.2, %v828_v29  ;;  %v861_v50 = vmul.f32 0.2, %v829_v30 }
 0x199   :  { %v862_v51 = vmul.f32 0.2, %v830_v31  ;;  %v863_v52 = vmul.f32 0.2, %v831_v34  ;;  %v864_v54 = vmul.f32 0.2, %v832_v35 }
 0x19a   :  { %v865_v57 = vmul.f32 0.2, %v833_v38  ;;  %v866_v13 = vmul.f32 0.2, %v834_v39  ;;  %v867_v32 = vmul.f32 0.2, %v835_v40  ;;  %v877_v6 = vsel %vm845_vm2, %v829_v30, %v861_v50 }
 0x19b   :  { %v868_v37 = vmul.f32 0.2, %v836_v41  ;;  %vm1777_vm7 = vcmp.ge.f32.partialorder %v828_v29, 0.0  ;;  %v869_v59 = vmul.f32 0.2, %v837_v42  ;;  %v878_v11 = vsel %vm846_vm3, %v830_v31, %v862_v51 }
 0x19c   :  { %v876_v55 = vsel %vm1777_vm7, %v828_v29, %v860_v49  ;;  %v870_v4 = vmul.f32 0.2, %v838_v43  ;;  %v871_v5 = vmul.f32 0.2, %v839_v44  ;;  %v872_v7 = vmul.f32 0.2, %v840_v45 }
 0x19d   :  { %v873_v8 = vmul.f32 0.2, %v841_v46  ;;  %v874_v9 = vmul.f32 0.2, %v842_v47  ;;  %v875_v12 = vmul.f32 0.2, %v843_v48  ;;  %v879_v15 = vsel %vm847_vm4, %v831_v34, %v863_v52 }
 0x19e   :  { %v880_v17 = vsel %vm848_vm5, %v832_v35, %v864_v54  ;;  %v881_v18 = vsel %vm849_vm6, %v833_v38, %v865_v57  ;;  %vm1778_vm1 = vcmp.ge.f32.partialorder %v834_v39, 0.0  ;;  %v883_v58 = vsel %vm851_vm8, %v835_v40, %v867_v32 }
 0x19f   :  { %v882_v19 = vsel %vm1778_vm1, %v834_v39, %v866_v13  ;;  %v884_v60 = vsel %vm852_vm9, %v836_v41, %v868_v37  ;;  %v885_v2 = vsel %vm853_vm10, %v837_v42, %v869_v59  ;;  %v886_v61 = vsel %vm854_vm11, %v838_v43, %v870_v4 }
 0x1a0   :  { %v887_v62 = vsel %vm855_vm12, %v839_v44, %v871_v5  ;;  %v888_v63 = vsel %vm856_vm13, %v840_v45, %v872_v7  ;;  %v889_v0 = vsel %vm857_vm14, %v841_v46, %v873_v8  ;;  %v890_v14 = vsel %vm858_vm15, %v842_v47, %v874_v9 }
 0x1a1   :  { %v891_v20 = vsel %vm859_vm0, %v843_v48, %v875_v12  ;;  %v1060_v21 = vpack.c.bf16 %v876_v55, %v876_v55  ;;  %v1061_v22 = vpack.c.bf16 %v877_v6, %v877_v6  ;;  %v1062_v23 = vpack.c.bf16 %v878_v11, %v878_v11 }
 0x1a2   :  { %v1063_v24 = vpack.c.bf16 %v879_v15, %v879_v15  ;;  %v1064_v16 = vpack.c.bf16 %v880_v17, %v880_v17  ;;  %v1065_v25 = vpack.c.bf16 %v881_v18, %v881_v18  ;;  %v1066_v33 = vpack.c.bf16 %v882_v19, %v882_v19 }
 0x1a3   :  { %v1067_v36 = vpack.c.bf16 %v883_v58, %v883_v58  ;;  %v1068_v53 = vpack.c.bf16 %v884_v60, %v884_v60  ;;  %v1069_v1 = vpack.c.bf16 %v885_v2, %v885_v2  ;;  %vm1779_vm1 = vcmask 519168  }
 0x1a4   :  { %957 = vst.msk [vmem:[%s1776_s5] sm:$0xf] %vm1779_vm1, %v1060_v21  ;;  %vm1780_vm2 = vmmov %vm1779_vm1  ;;  %v1070_v26 = vpack.c.bf16 %v886_v61, %v886_v61  ;;  %v1071_v56 = vpack.c.bf16 %v887_v62, %v887_v62  ;;  %v1072_v27 = vpack.c.bf16 %v888_v63, %v888_v63  ;;  %v1073_v10 = vpack.c.bf16 %v889_v0, %v889_v0 }
 0x1a5   :  { %958 = vst.msk [vmem:[%s1776_s5 + $0x4] sm:$0xf] %vm1780_vm2, %v1061_v22  ;;  %vm1781_vm3 = vmmov %vm1779_vm1  ;;  %v1074_v28 = vpack.c.bf16 %v890_v14, %v890_v14  ;;  %v1075_v3 = vpack.c.bf16 %v891_v20, %v891_v20 }
 0x1a6   :  { %959 = vst.msk [vmem:[%s1776_s5 + $0x8] sm:$0xf] %vm1781_vm3, %v1062_v23  ;;  %vm1782_vm4 = vmmov %vm1779_vm1 }
 0x1a7   :  { %960 = vst.msk [vmem:[%s1776_s5 + $0xc] sm:$0xf] %vm1782_vm4, %v1063_v24  ;;  %vm1783_vm5 = vmmov %vm1779_vm1 }
 0x1a8   :  { %961 = vst.msk [vmem:[%s1776_s5 + $0x10] sm:$0xf] %vm1783_vm5, %v1064_v16  ;;  %vm1784_vm6 = vmmov %vm1779_vm1 }
 0x1a9   :  { %962 = vst.msk [vmem:[%s1776_s5 + $0x14] sm:$0xf] %vm1784_vm6, %v1065_v25  ;;  %vm1785_vm7 = vmmov %vm1779_vm1 }
 0x1aa   :  { %963 = vst.msk [vmem:[%s1776_s5 + $0x18] sm:$0xf] %vm1785_vm7, %v1066_v33  ;;  %vm1786_vm8 = vmmov %vm1779_vm1 }
 0x1ab   :  { %964 = vst.msk [vmem:[%s1776_s5 + $0x1c] sm:$0xf] %vm1786_vm8, %v1067_v36  ;;  %vm1787_vm9 = vmmov %vm1779_vm1 }
 0x1ac   :  { %965 = vst.msk [vmem:[%s1776_s5 + $0x20] sm:$0xf] %vm1787_vm9, %v1068_v53  ;;  %vm1788_vm10 = vmmov %vm1779_vm1 }
 0x1ad   :  { %966 = vst.msk [vmem:[%s1776_s5 + $0x24] sm:$0xf] %vm1788_vm10, %v1069_v1  ;;  %vm1789_vm11 = vmmov %vm1779_vm1 }
 0x1ae   :  { %967 = vst.msk [vmem:[%s1776_s5 + $0x28] sm:$0xf] %vm1789_vm11, %v1070_v26  ;;  %vm1790_vm12 = vmmov %vm1779_vm1 }
 0x1af   :  { %968 = vst.msk [vmem:[%s1776_s5 + $0x2c] sm:$0xf] %vm1790_vm12, %v1071_v56  ;;  %vm1791_vm13 = vmmov %vm1779_vm1 }
 0x1b0   :  { %969 = vst.msk [vmem:[%s1776_s5 + $0x30] sm:$0xf] %vm1791_vm13, %v1072_v27  ;;  %vm1792_vm14 = vmmov %vm1779_vm1 }
 0x1b1   :  { %970 = vst.msk [vmem:[%s1776_s5 + $0x34] sm:$0xf] %vm1792_vm14, %v1073_v10  ;;  %vm1793_vm15 = vmmov %vm1779_vm1 }
 0x1b2   :  { %971 = vst.msk [vmem:[%s1776_s5 + $0x38] sm:$0xf] %vm1793_vm15, %v1074_v28  ;;  %vm1794_vm0 = vmmov %vm1779_vm1 }
 0x1b3   :  { %972 = vst.msk [vmem:[%s1776_s5 + $0x3c] sm:$0xf] %vm1794_vm0, %v1075_v3 }

// kernel: cdcgan_d_forward.5
= control target key start
LH: loop header
LB: loop body
LE: loop exit
PB: predicated region body
PF: predicated region fallthrough
CT: control target
= control target key end

     0   :  { %vm935_vm4 = vcmask 1040384   ;;  %vm945_vm5 = vcmask 1024   ;;  %s1520_s1 = inlined_call_operand.vmem [shape: bf16[1024,128], index: 1, kind: input, shape index: {}]   ;;  %s1521_s0 = inlined_call_operand.vmem [shape: bf16[32,1024], index: 0, kind: input, shape index: {}]   ;;  %s1522_s2 = inlined_call_operand.vmem [shape: f32[1,128], index: 2, kind: input, shape index: {}]   ;;  %s1523_s3 = inlined_call_operand.vmem [shape: f32[1,128], index: 3, kind: input, shape index: {}]   ;;  %s1524_s4 = inlined_call_operand.vmem [shape: f32[1,128], index: 4, kind: input, shape index: {}]   ;;  %s1525_s5 = inlined_call_operand.vmem [shape: f32[32,128], index: 5, kind: input, shape index: {}]   ;;  %s1526_s6 = inlined_call_operand.<no memory space> [shape: f32[1,1], index: 6, kind: input, shape index: {}]   ;;  %s1527_s7 = inlined_call_operand.vmem [shape: f32[2,1], index: 7, kind: output, shape index: {}]  }
   0x1   :  { %v1147_v0 = vld [vmem:[%s1520_s1 + $0x40] sm:$0xff]   ;;  %v1151_v4 = vld [vmem:[%s1520_s1 + $0x48] sm:$0xff]   ;;  %v1155_v8 = vld [vmem:[%s1520_s1 + $0x50] sm:$0xff]  }
   0x2   :  { %v1148_v1 = vld [vmem:[%s1520_s1 + $0xc0] sm:$0xff]   ;;  %1035 = vmatprep.subr.bf16.mxu0 %v1147_v0  ;;  %v1152_v5 = vld [vmem:[%s1520_s1 + $0xc8] sm:$0xff]   ;;  %v1156_v9 = vld [vmem:[%s1520_s1 + $0xd0] sm:$0xff]  }
   0x3   :  { %v1149_v2 = vld [vmem:[%s1520_s1] sm:$0xff]   ;;  %1063 = vmatprep.subr.bf16.mxu1 %v1148_v1  ;;  %v1153_v6 = vld [vmem:[%s1520_s1 + $0x8] sm:$0xff]   ;;  %v1157_v10 = vld [vmem:[%s1520_s1 + $0x10] sm:$0xff]  }
   0x4   :  { %v1150_v3 = vld [vmem:[%s1520_s1 + $0x80] sm:$0xff]   ;;  %1036 = vmatpush3.bf16.msra.mxu0 %v1149_v2  ;;  %v1154_v7 = vld [vmem:[%s1520_s1 + $0x88] sm:$0xff]   ;;  %v1158_v11 = vld [vmem:[%s1520_s1 + $0x90] sm:$0xff]  }
   0x5   :  { %1064 = vmatpush3.bf16.msra.mxu1 %v1150_v3  ;;  %1037 = vmatprep.subr.bf16.mxu0 %v1151_v4  ;;  %v1159_v12 = vld [vmem:[%s1520_s1 + $0x58] sm:$0xff]   ;;  %v1163_v16 = vld [vmem:[%s1520_s1 + $0x60] sm:$0xff]   ;;  %v1167_v20 = vld [vmem:[%s1520_s1 + $0x68] sm:$0xff]  }
   0x6   :  { %1065 = vmatprep.subr.bf16.mxu1 %v1152_v5  ;;  %v1160_v13 = vld [vmem:[%s1520_s1 + $0xd8] sm:$0xff]   ;;  %v1164_v17 = vld [vmem:[%s1520_s1 + $0xe0] sm:$0xff]   ;;  %v1168_v21 = vld [vmem:[%s1520_s1 + $0xe8] sm:$0xff]  }
   0x7   :  { %v1161_v14 = vld [vmem:[%s1520_s1 + $0x18] sm:$0xff]   ;;  %v1165_v18 = vld [vmem:[%s1520_s1 + $0x20] sm:$0xff]   ;;  %v1169_v22 = vld [vmem:[%s1520_s1 + $0x28] sm:$0xff]  }
   0x8   :  { %1038 = vmatpush3.bf16.msra.mxu0 %v1153_v6  ;;  %v1162_v15 = vld [vmem:[%s1520_s1 + $0x98] sm:$0xff]   ;;  %v1166_v19 = vld [vmem:[%s1520_s1 + $0xa0] sm:$0xff]   ;;  %v1170_v23 = vld [vmem:[%s1520_s1 + $0xa8] sm:$0xff]  }
   0x9   :  { %1066 = vmatpush3.bf16.msra.mxu1 %v1154_v7  ;;  %1039 = vmatprep.subr.bf16.mxu0 %v1155_v8  ;;  %v1171_v24 = vld [vmem:[%s1520_s1 + $0x70] sm:$0xff]   ;;  %v1175_v28 = vld [vmem:[%s1520_s1 + $0x78] sm:$0xff]   ;;  %v29_v32 = vld [vmem:[%s1521_s0] sm:$0xff] }
   0xa   :  { %1067 = vmatprep.subr.bf16.mxu1 %v1156_v9  ;;  %v1172_v25 = vld [vmem:[%s1520_s1 + $0xf0] sm:$0xff]   ;;  %v1176_v29 = vld [vmem:[%s1520_s1 + $0xf8] sm:$0xff]   ;;  %v33_v33 = vld [vmem:[%s1521_s0 + $0x20] sm:$0xff] }
   0xb   :  { %v1173_v26 = vld [vmem:[%s1520_s1 + $0x30] sm:$0xff]   ;;  %v1177_v30 = vld [vmem:[%s1520_s1 + $0x38] sm:$0xff]   ;;  %v30_v34 = vld [vmem:[%s1521_s0 + $0x8] sm:$0xff]  ;;  %v952_v35 = vcombine.low %v29_v32, %v33_v33  ;;  %v953_v36 = vcombine.high %v29_v32, %v33_v33 }
   0xc   :  { %1040 = vmatpush3.bf16.msra.mxu0 %v1157_v10  ;;  %v1174_v27 = vld [vmem:[%s1520_s1 + $0xb0] sm:$0xff]   ;;  %v1178_v31 = vld [vmem:[%s1520_s1 + $0xb8] sm:$0xff]   ;;  %v34_v37 = vld [vmem:[%s1521_s0 + $0x28] sm:$0xff] }
   0xd   :  { %1068 = vmatpush3.bf16.msra.mxu1 %v1158_v11  ;;  %1041 = vmatprep.subr.bf16.mxu0 %v1159_v12  ;;  %v954_v38 = vcombine.low %v30_v34, %v34_v37  ;;  %v955_v39 = vcombine.high %v30_v34, %v34_v37  ;;  %v1179_v40 = vld [vmem:[%s1520_s1 + $0x140] sm:$0xff]   ;;  %v1183_v44 = vld [vmem:[%s1520_s1 + $0x148] sm:$0xff]   ;;  %v1187_v48 = vld [vmem:[%s1520_s1 + $0x150] sm:$0xff]  }
   0xe   :  { %1069 = vmatprep.subr.bf16.mxu1 %v1160_v13  ;;  %676 = vmatprep.mubr.bf16.mxu0 %v953_v36  ;;  %v1180_v41 = vld [vmem:[%s1520_s1 + $0x1c0] sm:$0xff]   ;;  %v1184_v45 = vld [vmem:[%s1520_s1 + $0x1c8] sm:$0xff]   ;;  %v1188_v49 = vld [vmem:[%s1520_s1 + $0x1d0] sm:$0xff]  }
   0xf   :  { %725 = vmatprep.mubr.bf16.mxu1 %v955_v39  ;;  %v1181_v42 = vld [vmem:[%s1520_s1 + $0x100] sm:$0xff]   ;;  %v1185_v46 = vld [vmem:[%s1520_s1 + $0x108] sm:$0xff]   ;;  %v1189_v50 = vld [vmem:[%s1520_s1 + $0x110] sm:$0xff]  }
  0x10   :  { %1042 = vmatpush3.bf16.msra.mxu0 %v1161_v14  ;;  %v1182_v43 = vld [vmem:[%s1520_s1 + $0x180] sm:$0xff]   ;;  %v1186_v47 = vld [vmem:[%s1520_s1 + $0x188] sm:$0xff]   ;;  %v1190_v51 = vld [vmem:[%s1520_s1 + $0x190] sm:$0xff]  }
  0x11   :  { %1070 = vmatpush3.bf16.msra.mxu1 %v1162_v15  ;;  %1043 = vmatprep.subr.bf16.mxu0 %v1163_v16  ;;  %v1191_v52 = vld [vmem:[%s1520_s1 + $0x158] sm:$0xff]   ;;  %v1195_v56 = vld [vmem:[%s1520_s1 + $0x160] sm:$0xff]   ;;  %v1199_v63 = vld [vmem:[%s1520_s1 + $0x168] sm:$0xff]  }
  0x12   :  { %1071 = vmatprep.subr.bf16.mxu1 %v1164_v17  ;;  %v1192_v53 = vld [vmem:[%s1520_s1 + $0x1d8] sm:$0xff]   ;;  %v1196_v57 = vld [vmem:[%s1520_s1 + $0x1e0] sm:$0xff]   ;;  %v1200_v1 = vld [vmem:[%s1520_s1 + $0x1e8] sm:$0xff]  }
  0x13   :  { %v1193_v54 = vld [vmem:[%s1520_s1 + $0x118] sm:$0xff]   ;;  %v1197_v58 = vld [vmem:[%s1520_s1 + $0x120] sm:$0xff]   ;;  %v1201_v2 = vld [vmem:[%s1520_s1 + $0x128] sm:$0xff]  }
  0x14   :  { %1044 = vmatpush3.bf16.msra.mxu0 %v1165_v18  ;;  %v1194_v55 = vld [vmem:[%s1520_s1 + $0x198] sm:$0xff]   ;;  %v1198_v59 = vld [vmem:[%s1520_s1 + $0x1a0] sm:$0xff]   ;;  %v1202_v3 = vld [vmem:[%s1520_s1 + $0x1a8] sm:$0xff]  }
  0x15   :  { %1072 = vmatpush3.bf16.msra.mxu1 %v1166_v19  ;;  %1045 = vmatprep.subr.bf16.mxu0 %v1167_v20  ;;  %v37_v60 = vld [vmem:[%s1521_s0 + $0x40] sm:$0xff]  ;;  %v38_v4 = vld [vmem:[%s1521_s0 + $0x48] sm:$0xff]  ;;  %v1203_v8 = vld [vmem:[%s1520_s1 + $0x170] sm:$0xff]  }
  0x16   :  { %1073 = vmatprep.subr.bf16.mxu1 %v1168_v21  ;;  %v41_v61 = vld [vmem:[%s1521_s0 + $0x60] sm:$0xff]  ;;  %v42_v5 = vld [vmem:[%s1521_s0 + $0x68] sm:$0xff]  ;;  %v1204_v9 = vld [vmem:[%s1520_s1 + $0x1f0] sm:$0xff]  }
  0x17   :  { %v961_v62 = vcombine.high %v37_v60, %v41_v61  ;;  %v960_v0 = vcombine.low %v37_v60, %v41_v61  ;;  %v963_v6 = vcombine.high %v38_v4, %v42_v5  ;;  %v962_v7 = vcombine.low %v38_v4, %v42_v5  ;;  %v1205_v10 = vld [vmem:[%s1520_s1 + $0x130] sm:$0xff]   ;;  %v1207_v12 = vld [vmem:[%s1520_s1 + $0x178] sm:$0xff]   ;;  %v951_v34 = vld [vmem:[%s1522_s2] ss:$0 sm:$0xff] }
  0x18   :  { %1046 = vmatpush3.bf16.msra.mxu0 %v1169_v22  ;;  %v1206_v11 = vld [vmem:[%s1520_s1 + $0x1b0] sm:$0xff]   ;;  %v1208_v13 = vld [vmem:[%s1520_s1 + $0x1f8] sm:$0xff]  }
  0x19   :  { %1074 = vmatpush3.bf16.msra.mxu1 %v1170_v23  ;;  %1047 = vmatprep.subr.bf16.mxu0 %v1171_v24  ;;  %v1209_v14 = vld [vmem:[%s1520_s1 + $0x138] sm:$0xff]   ;;  %v31_v16 = vld [vmem:[%s1521_s0 + $0x10] sm:$0xff] }
  0x1a   :  { %1075 = vmatprep.subr.bf16.mxu1 %v1172_v25  ;;  %v1210_v15 = vld [vmem:[%s1520_s1 + $0x1b8] sm:$0xff]   ;;  %v35_v17 = vld [vmem:[%s1521_s0 + $0x30] sm:$0xff] }
  0x1b   :  { %v32_v18 = vld [vmem:[%s1521_s0 + $0x18] sm:$0xff]  ;;  %v956_v20 = vcombine.low %v31_v16, %v35_v17  ;;  %v957_v21 = vcombine.high %v31_v16, %v35_v17  ;;  %v39_v24 = vld [vmem:[%s1521_s0 + $0x50] sm:$0xff] }
  0x1c   :  { %1048 = vmatpush3.bf16.msra.mxu0 %v1173_v26  ;;  %v36_v19 = vld [vmem:[%s1521_s0 + $0x38] sm:$0xff]  ;;  %v43_v25 = vld [vmem:[%s1521_s0 + $0x70] sm:$0xff] }
  0x1d   :  { %1076 = vmatpush3.bf16.msra.mxu1 %v1174_v27  ;;  %1049 = vmatprep.subr.bf16.mxu0 %v1175_v28  ;;  %v958_v22 = vcombine.low %v32_v18, %v36_v19  ;;  %v959_v23 = vcombine.high %v32_v18, %v36_v19  ;;  %v40_v26 = vld [vmem:[%s1521_s0 + $0x58] sm:$0xff]  ;;  %v965_v27 = vcombine.high %v39_v24, %v43_v25 }
  0x1e   :  { %1077 = vmatprep.subr.bf16.mxu1 %v1176_v29  ;;  %v44_v28 = vld [vmem:[%s1521_s0 + $0x78] sm:$0xff] }
  0x1f   :  { %v967_v29 = vcombine.high %v40_v26, %v44_v28 }
  0x20   :  { %1050 = vmatpush3.bf16.msra.mxu0 %v1177_v30  ;;  %v964_v30 = vcombine.low %v39_v24, %v43_v25 }
  0x21   :  { %1078 = vmatpush3.bf16.msra.mxu1 %v1178_v31  ;;  %1091 = vmatprep.subr.bf16.mxu0 %v1179_v40  ;;  %v966_v31 = vcombine.low %v40_v26, %v44_v28 }
  0x22   :  { %1119 = vmatprep.subr.bf16.mxu1 %v1180_v41 }
  0x23   :  { %677 = vmatmul.mubr.bf16.vlgmr.msra.gmra.mrb[0].mxu0 %v952_v35 }
  0x24   :  { %726 = vmatmul.mubr.bf16.vlgmr.msra.gmra.mrb[0].mxu1 %v954_v38  ;;  %1092 = vmatpush3.bf16.msra.mxu0 %v1181_v42 }
  0x25   :  { %1120 = vmatpush3.bf16.msra.mxu1 %v1182_v43  ;;  %1093 = vmatprep.subr.bf16.mxu0 %v1183_v44 }
  0x26   :  { %1121 = vmatprep.subr.bf16.mxu1 %v1184_v45  ;;  %684 = vmatprep.mubr.bf16.mxu0 %v961_v62 }
  0x27   :  { %733 = vmatprep.mubr.bf16.mxu1 %v963_v6 }
  0x28   :  { %1094 = vmatpush3.bf16.msra.mxu0 %v1185_v46 }
  0x29   :  { %1122 = vmatpush3.bf16.msra.mxu1 %v1186_v47  ;;  %1095 = vmatprep.subr.bf16.mxu0 %v1187_v48 }
  0x2a   :  { %1123 = vmatprep.subr.bf16.mxu1 %v1188_v49 }
  0x2b   :  { %685 = vmatmul.mubr.bf16.gmra.mrb[4].mxu0 %v960_v0 }
  0x2c   :  { %1096 = vmatpush3.bf16.msra.mxu0 %v1189_v50  ;;  %734 = vmatmul.mubr.bf16.gmra.mrb[4].mxu1 %v962_v7 }
  0x2d   :  { %1124 = vmatpush3.bf16.msra.mxu1 %v1190_v51  ;;  %1097 = vmatprep.subr.bf16.mxu0 %v1191_v52 }
  0x2e   :  { %1125 = vmatprep.subr.bf16.mxu1 %v1192_v53  ;;  %774 = vmatprep.mubr.bf16.mxu0 %v957_v21 }
  0x2f   :  { %823 = vmatprep.mubr.bf16.mxu1 %v959_v23 }
  0x30   :  { %1098 = vmatpush3.bf16.msra.mxu0 %v1193_v54 }
  0x31   :  { %1126 = vmatpush3.bf16.msra.mxu1 %v1194_v55  ;;  %1099 = vmatprep.subr.bf16.mxu0 %v1195_v56 }
  0x32   :  { %1127 = vmatprep.subr.bf16.mxu1 %v1196_v57 }
  0x34   :  { %1100 = vmatpush3.bf16.msra.mxu0 %v1197_v58 }
  0x35   :  { %1128 = vmatpush3.bf16.msra.mxu1 %v1198_v59  ;;  %1101 = vmatprep.subr.bf16.mxu0 %v1199_v63 }
  0x36   :  { %1129 = vmatprep.subr.bf16.mxu1 %v1200_v1 }
  0x38   :  { %1102 = vmatpush3.bf16.msra.mxu0 %v1201_v2 }
  0x39   :  { %1130 = vmatpush3.bf16.msra.mxu1 %v1202_v3  ;;  %1103 = vmatprep.subr.bf16.mxu0 %v1203_v8 }
  0x3a   :  { %1131 = vmatprep.subr.bf16.mxu1 %v1204_v9 }
  0x3c   :  { %1104 = vmatpush3.bf16.msra.mxu0 %v1205_v10 }
  0x3d   :  { %1132 = vmatpush3.bf16.msra.mxu1 %v1206_v11  ;;  %1105 = vmatprep.subr.bf16.mxu0 %v1207_v12 }
  0x3e   :  { %1133 = vmatprep.subr.bf16.mxu1 %v1208_v13 }
  0x40   :  { %1106 = vmatpush3.bf16.msra.mxu0 %v1209_v14 }
  0x41   :  { %1134 = vmatpush3.bf16.msra.mxu1 %v1210_v15 }
  0x43   :  { %775 = vmatmul.mubr.bf16.vlgmr.msra.gmra.mrb[8].mxu0 %v956_v20 }
  0x44   :  { %824 = vmatmul.mubr.bf16.vlgmr.msra.gmra.mrb[8].mxu1 %v958_v22  ;;  %782 = vmatprep.mubr.bf16.mxu0 %v965_v27 }
  0x45   :  { %831 = vmatprep.mubr.bf16.mxu1 %v967_v29 }
  0x4b   :  { %783 = vmatmul.mubr.bf16.gmra.mrb[12].mxu0 %v964_v30 }
  0x4c   :  { %832 = vmatmul.mubr.bf16.gmra.mrb[12].mxu1 %v966_v31 }
  0xf6   :  { %v1051_v32 = vpop.f32.mrb[0].mxu0 }
  0xf7   :  { %v1079_v33 = vpop.f32.mrb[0].mxu1  ;;  %v1052_v35 = vpop.f32.mrb[1].mxu0 }
  0xf8   :  { %v1053_v36 = vadd.f32 %v1052_v35, %v1051_v32  ;;  %v1080_v37 = vpop.f32.mrb[1].mxu1  ;;  %v1054_v38 = vpop.f32.mrb[2].mxu0 }
  0xf9   :  { %v1081_v39 = vadd.f32 %v1080_v37, %v1079_v33  ;;  %v1082_v40 = vpop.f32.mrb[2].mxu1  ;;  %v1055_v41 = vpop.f32.mrb[3].mxu0 }
  0xfa   :  { %v679_v42 = vadd.f32 %v1053_v36, %v951_v34  ;;  %v1056_v43 = vadd.f32 %v1055_v41, %v1054_v38  ;;  %v1083_v44 = vpop.f32.mrb[3].mxu1 }
  0xfb   :  { %v1084_v45 = vadd.f32 %v1083_v44, %v1082_v40 }
  0xfc   :  { %v728_v46 = vadd.f32 %v1081_v39, %v679_v42  ;;  %v682_v47 = vadd.f32 %v1056_v43, %v951_v34 }
  0xfe   :  { %v731_v48 = vadd.f32 %v1084_v45, %v682_v47  ;;  %v1057_v49 = vpop.f32.mrb[4].mxu0 }
  0xff   :  { %v1058_v50 = vpop.f32.mrb[5].mxu0  ;;  %v1085_v56 = vpop.f32.mrb[4].mxu1 }
 0x100   :  { %v1059_v51 = vadd.f32 %v1058_v50, %v1057_v49  ;;  %v1060_v52 = vpop.f32.mrb[6].mxu0  ;;  %v1086_v57 = vpop.f32.mrb[5].mxu1 }
 0x101   :  { %v1061_v53 = vpop.f32.mrb[7].mxu0  ;;  %v1087_v59 = vadd.f32 %v1086_v57, %v1085_v56  ;;  %v1088_v60 = vpop.f32.mrb[6].mxu1 }
 0x102   :  { %v1062_v54 = vadd.f32 %v1061_v53, %v1060_v52  ;;  %v687_v55 = vadd.f32 %v1059_v51, %v951_v34  ;;  %v1089_v61 = vpop.f32.mrb[7].mxu1 }
 0x103   :  { %v1090_v63 = vadd.f32 %v1089_v61, %v1088_v60 }
 0x104   :  { %v690_v58 = vadd.f32 %v1062_v54, %v951_v34  ;;  %v736_v62 = vadd.f32 %v1087_v59, %v687_v55 }
 0x106   :  { %v739_v0 = vadd.f32 %v1090_v63, %v690_v58  ;;  %v1032_v63 = vld [vmem:[%s1523_s3] ss:$0 sm:$0xff] }
 0x116   :  { %v1107_v1 = vpop.f32.mrb[8].mxu0 }
 0x117   :  { %v1135_v2 = vpop.f32.mrb[8].mxu1  ;;  %v1108_v3 = vpop.f32.mrb[9].mxu0 }
 0x118   :  { %v1136_v4 = vpop.f32.mrb[9].mxu1  ;;  %v1109_v5 = vadd.f32 %v1108_v3, %v1107_v1  ;;  %v1110_v7 = vpop.f32.mrb[10].mxu0 }
 0x119   :  { %v1137_v6 = vadd.f32 %v1136_v4, %v1135_v2  ;;  %v1138_v8 = vpop.f32.mrb[10].mxu1  ;;  %v1111_v9 = vpop.f32.mrb[11].mxu0  ;;  %v1033_v4 = vld [vmem:[%s1524_s4] ss:$0 sm:$0xff] }
 0x11a   :  { %v1139_v10 = vpop.f32.mrb[11].mxu1  ;;  %v777_v11 = vadd.f32 %v1109_v5, %v728_v46  ;;  %v1112_v12 = vadd.f32 %v1111_v9, %v1110_v7 }
 0x11b   :  { %v1140_v13 = vadd.f32 %v1139_v10, %v1138_v8 }
 0x11c   :  { %v826_v14 = vadd.f32 %v1137_v6, %v777_v11  ;;  %v780_v15 = vadd.f32 %v1112_v12, %v731_v48  ;;  %v909_v12 = vld [vmem:[%s1525_s5] sm:$0xff] }
 0x11e   :  { %v829_v16 = vadd.f32 %v1140_v13, %v780_v15  ;;  %v1113_v17 = vpop.f32.mrb[12].mxu0  ;;  %v911_v15 = vld [vmem:[%s1525_s5 + $0x10] sm:$0xff] }
 0x11f   :  { %v1141_v18 = vpop.f32.mrb[12].mxu1  ;;  %v1114_v19 = vpop.f32.mrb[13].mxu0 }
 0x120   :  { %v1142_v20 = vpop.f32.mrb[13].mxu1  ;;  %v840_v21 = vadd.f32 %v829_v16, %v826_v14  ;;  %v1115_v22 = vadd.f32 %v1114_v19, %v1113_v17  ;;  %v1116_v24 = vpop.f32.mrb[14].mxu0 }
 0x121   :  { %v1143_v23 = vadd.f32 %v1142_v20, %v1141_v18  ;;  %v1144_v25 = vpop.f32.mrb[14].mxu1  ;;  %v1117_v26 = vpop.f32.mrb[15].mxu0 }
 0x122   :  { %v1145_v27 = vpop.f32.mrb[15].mxu1  ;;  %v785_v28 = vadd.f32 %v1115_v22, %v736_v62  ;;  %v1118_v29 = vadd.f32 %v1117_v26, %v1116_v24 }
 0x123   :  { %v1146_v30 = vadd.f32 %v1145_v27, %v1144_v25 }
 0x124   :  { %v834_v31 = vadd.f32 %v1143_v23, %v785_v28  ;;  %v788_v32 = vadd.f32 %v1118_v29, %v739_v0 }
 0x126   :  { %v841_v33 = vadd.f32 %v840_v21, %v834_v31  ;;  %v837_v34 = vadd.f32 %v1146_v30, %v788_v32 }
 0x128   :  { %v842_v35 = vadd.f32 %v841_v33, %v837_v34 }
 0x12a   :  { %v843_v36 = vrot.slane %v842_v35, 4 }
 0x12c   :  { %v844_v37 = vadd.f32 %v843_v36, %v842_v35 }
 0x12e   :  { %v845_v38 = vrot.slane %v844_v37, 2 }
 0x130   :  { %v846_v39 = vadd.f32 %v845_v38, %v844_v37 }
 0x132   :  { %v847_v40 = vrot.slane %v846_v39, 1 }
 0x134   :  { %v848_v41 = vadd.f32 %v847_v40, %v846_v39 }
 0x136   :  { %v850_v42 = vmul.f32 0.03125, %v848_v41 }
 0x138   :  { %v851_v43 = vsub.f32 %v826_v14, %v850_v42  ;;  %v852_v44 = vsub.f32 %v829_v16, %v850_v42  ;;  %v853_v45 = vsub.f32 %v834_v31, %v850_v42  ;;  %v854_v46 = vsub.f32 %v837_v34, %v850_v42  ;;  %v910_v14 = vld [vmem:[%s1525_s5 + $0x8] sm:$0xff]  ;;  %v912_v16 = vld [vmem:[%s1525_s5 + $0x18] sm:$0xff] }
 0x13a   :  { %v855_v47 = vmul.f32 %v851_v43, %v851_v43  ;;  %v856_v48 = vmul.f32 %v852_v44, %v852_v44  ;;  %v857_v49 = vmul.f32 %v853_v45, %v853_v45  ;;  %v858_v51 = vmul.f32 %v854_v46, %v854_v46 }
 0x13c   :  { %v859_v50 = vadd.f32 %v856_v48, %v855_v47 }
 0x13e   :  { %v860_v52 = vadd.f32 %v859_v50, %v857_v49 }
 0x140   :  { %v861_v53 = vadd.f32 %v860_v52, %v858_v51 }
 0x142   :  { %v862_v54 = vrot.slane %v861_v53, 4 }
 0x144   :  { %v863_v55 = vadd.f32 %v862_v54, %v861_v53 }
 0x146   :  { %v864_v56 = vrot.slane %v863_v55, 2 }
 0x148   :  { %v865_v57 = vadd.f32 %v864_v56, %v863_v55 }
 0x14a   :  { %v866_v58 = vrot.slane %v865_v57, 1 }
 0x14c   :  { %v867_v59 = vadd.f32 %v866_v58, %v865_v57 }
 0x14e   :  { %v868_v60 = vmul.f32 0.03125, %v867_v59 }
 0x150   :  { %v869_v61 = vadd.f32 1e-05, %v868_v60 }
 0x152   :  { %1211 = vrsqrt.f32 %v869_v61 }
 0x15c   :  { %v1212_v62 = vpop.eup %1211 }
 0x15d   :  { %v873_v0 = vmul.f32 %v1212_v62, %v853_v45  ;;  %v874_v1 = vmul.f32 %v1212_v62, %v854_v46  ;;  %v871_v2 = vmul.f32 %v1212_v62, %v851_v43  ;;  %v872_v3 = vmul.f32 %v1212_v62, %v852_v44 }
 0x15e   :  { %v12_v43 = vstv %s1526_s6 }
 0x15f   :  { %v884_v5 = vmul.f32 %v1032_v63, %v873_v0  ;;  %v885_v6 = vmul.f32 %v1032_v63, %v874_v1  ;;  %v882_v7 = vmul.f32 %v1032_v63, %v871_v2  ;;  %v883_v8 = vmul.f32 %v1032_v63, %v872_v3  ;;  %13 = vst [vmem:[#allocation2] sm:$0x1] %v12_v43 }
 0x161   :  { %v896_v9 = vadd.f32 %v1033_v4, %v885_v6  ;;  %v893_v10 = vadd.f32 %v1033_v4, %v882_v7  ;;  %v894_v11 = vadd.f32 %v1033_v4, %v883_v8  ;;  %v895_v13 = vadd.f32 %v1033_v4, %v884_v5 }
 0x163   :  { %vm897_vm0 = vcmp.ge.f32.partialorder %v893_v10, 0.0  ;;  %vm898_vm1 = vcmp.ge.f32.partialorder %v894_v11, 0.0  ;;  %v901_v17 = vmul.f32 0.2, %v893_v10  ;;  %v902_v18 = vmul.f32 0.2, %v894_v11 }
 0x164   :  { %vm899_vm2 = vcmp.ge.f32.partialorder %v895_v13, 0.0  ;;  %vm900_vm3 = vcmp.ge.f32.partialorder %v896_v9, 0.0  ;;  %v903_v19 = vmul.f32 0.2, %v895_v13  ;;  %v904_v20 = vmul.f32 0.2, %v896_v9 }
 0x165   :  { %v905_v21 = vsel %vm897_vm0, %v893_v10, %v901_v17  ;;  %v906_v22 = vsel %vm898_vm1, %v894_v11, %v902_v18 }
 0x166   :  { %v913_v23 = vmul.f32 %v909_v12, %v905_v21  ;;  %v914_v24 = vmul.f32 %v910_v14, %v906_v22  ;;  %v907_v25 = vsel %vm899_vm2, %v895_v13, %v903_v19  ;;  %v908_v26 = vsel %vm900_vm3, %v896_v9, %v904_v20  ;;  %v1034_v45 = vld [vmem:[#allocation2] ss:$0 sm:$0xff] }
 0x167   :  { %v915_v27 = vmul.f32 %v911_v15, %v907_v25  ;;  %v916_v28 = vmul.f32 %v912_v16, %v908_v26 }
 0x168   :  { %v917_v29 = vadd.f32 %v914_v24, %v913_v23 }
 0x169   :  { %v926_v30 = vadd.f32 %v916_v28, %v915_v27 }
 0x16a   :  { %v918_v31 = vrot.slane %v917_v29, 4 }
 0x16b   :  { %v927_v32 = vrot.slane %v926_v30, 4 }
 0x16c   :  { %v919_v33 = vadd.f32 %v918_v31, %v917_v29 }
 0x16d   :  { %v928_v34 = vadd.f32 %v927_v32, %v926_v30 }
 0x16e   :  { %v920_v35 = vrot.slane %v919_v33, 2 }
 0x16f   :  { %v929_v36 = vrot.slane %v928_v34, 2 }
 0x170   :  { %v921_v37 = vadd.f32 %v920_v35, %v919_v33 }
 0x171   :  { %v930_v38 = vadd.f32 %v929_v36, %v928_v34 }
 0x172   :  { %v922_v39 = vrot.slane %v921_v37, 1 }
 0x173   :  { %v931_v41 = vrot.slane %v930_v38, 1 }
 0x174   :  { %v923_v40 = vadd.f32 %v922_v39, %v921_v37 }
 0x175   :  { %v932_v42 = vadd.f32 %v931_v41, %v930_v38 }
 0x176   :  { %924 = vadd.xlane.f32.xlu0 %v923_v40 }
 0x17a   :  { %933 = vadd.xlane.f32.xlu0 %v932_v42 }
 0x203   :  { %v925_v44 = vpop.xlane.xlu0 %924 }
 0x207   :  { %v934_v46 = vpop.xlane.xlu0 %933 }
 0x208   :  { %v936_v47 = vsel %vm935_vm4, %v925_v44, %v934_v46 }
 0x209   :  { %v944_v48 = vadd.f32 %v1034_v45, %v936_v47 }
 0x20b   :  { %946 = vst.msk [vmem:[%s1527_s7] sm:$0x3] %vm945_vm5, %v944_v48 }

</bundles_post_ra>
